<compile_context>
chip_gen: v7x
topology: tpu7x:2x2x1
jax: 0.10.0
libtpu: 0.0.40
codegen_flags: <defaults>
</compile_context>

<pallas_src>
import functools

import jax
import jax.numpy as jnp
from jax import lax
from jax.experimental import pallas as pl
from jax.experimental.pallas import tpu as pltpu
from jax.scipy.special import logsumexp

NEG = -1e12  # same additive mask constant as the PyTorch module


def _pick_tile(dim, candidates, quantum):
    """Largest candidate that tiles `dim` and respects the layout quantum, else full extent.
    TODO(synk): unaligned huge dims fall back to a single full-extent block (VMEM risk)."""
    for t in candidates:
        if t <= dim and dim % t == 0 and t % quantum == 0:
            return t
    return dim


# ----------------------------------------------------------------------------
# Fused kernel: per-clip MXU matmuls + clip-logsumexp + MIL-NCE partial statistics
# ----------------------------------------------------------------------------
def _fused_sim_loss_kernel(t_ref, v_ref, lse_ref, rlse_ref, clse_ref, clsem_ref,
                           acc_ref, *, n_pair):
    # t_ref   : (tm, H)        bf16   text tile
    # v_ref   : (C, H, tbv)    bf16   clip-major, (K,N)-major video tile
    # lse_ref : (tm, tbv)      f32    clip-logsumexp  (module output l1_simi)
    # rlse_ref: (1, tm, 1)     f32    partial row-LSE of diag-masked clip_lse  (text half)
    # clse_ref: (1, 1, tbv)    f32    partial column-LSE of the mid-clip plane (video half)
    # clsem_ref:(1, 1, tbv)    f32    same, block-diagonal masked
    # acc_ref : (C, tm, tbv)   f32    VMEM scratch holding the per-clip similarity planes
    i = pl.program_id(0)
    j = pl.program_id(1)
    tm, tbv = lse_ref.shape

    t = t_ref[...]
    for c in range(n_pair):                 # static unroll, n_pair is small (1-8)
        acc_ref[c] = lax.dot_general(
            t, v_ref[c],
            dimension_numbers=(((1,), (0,)), ((), ())),   # plain (tm,H) @ (H,tbv)
            preferred_element_type=jnp.float32)

    # ---- clip-wise logsumexp (reduce_clips('l1')) -------------------------------------
    m = acc_ref[0]
    for c in range(1, n_pair):
        m = jnp.maximum(m, acc_ref[c])
    s = jnp.exp(acc_ref[0] - m)
    for c in range(1, n_pair):
        s = s + jnp.exp(acc_ref[c] - m)
    clip_lse = m + jnp.log(s)                                   # (tm, tbv) f32
    lse_ref[...] = clip_lse

    # ---- MIL-NCE partial statistics (mask depends only on text/video index) -----------
    row_g = i * tm + lax.broadcasted_iota(jnp.int32, (tm, tbv), 0)   # global text idx
    col_g = j * tbv + lax.broadcasted_iota(jnp.int32, (tm, tbv), 1)  # global video idx
    same = (row_g == col_g).astype(jnp.float32)                 # in-kernel kron(eye, ones)

    # text half: LSE over (clips, videos) of sim + [video==text]*NEG
    #          == LSE over videos of (clip_lse + [video==text]*NEG); partial over this tile.
    xm = clip_lse + same * NEG
    m_r = jnp.max(xm, axis=-1, keepdims=True)                   # (tm, 1)
    s_r = jnp.sum(jnp.exp(xm - m_r), axis=-1, keepdims=True)
    rlse_ref[...] = (m_r + jnp.log(s_r))[None]                  # (1, tm, 1)

    # video half: column-LSE (over texts) of the mid-clip plane, unmasked and diag-masked.
    s_mid = acc_ref[n_pair // 2]                                # (tm, tbv)
    m_c = jnp.max(s_mid, axis=0, keepdims=True)                 # (1, tbv)
    s_c = jnp.sum(jnp.exp(s_mid - m_c), axis=0, keepdims=True)
    clse_ref[...] = (m_c + jnp.log(s_c))[None]                  # (1, 1, tbv)

    s_mid_m = s_mid + (1.0 - same) * NEG
    m_cm = jnp.max(s_mid_m, axis=0, keepdims=True)
    s_cm = jnp.sum(jnp.exp(s_mid_m - m_cm), axis=0, keepdims=True)
    clsem_ref[...] = (m_cm + jnp.log(s_cm))[None]


def _l1_sim_and_loss_stats(text_embed, video_embed, num_clips,
                           matmul_dtype=jnp.bfloat16, tile_t=256, tile_v=256):
    bt, h = text_embed.shape
    assert video_embed.shape[0] % num_clips == 0
    bv = video_embed.shape[0] // num_clips

    # clip-major, (K, N)-major video layout (single XLA relayout fused with the cast)
    v_in = jnp.transpose(video_embed.reshape(bv, num_clips, h), (1, 2, 0)).astype(matmul_dtype)
    t_in = text_embed.astype(matmul_dtype)

    tm = _pick_tile(bt, (tile_t, 256, 128), 8)
    tbv = _pick_tile(bv, (tile_v, 256, 128), 128)
    gi, gj = bt // tm, bv // tbv

    itemsize = jnp.dtype(matmul_dtype).itemsize
    need = (2 * (tm * h + num_clips * h * tbv) * itemsize          # double-buffered operands
            + 2 * (tm * tbv + tm + 2 * tbv) * 4                    # double-buffered outputs
            + num_clips * tm * tbv * 4)                            # scratch planes
    vmem_limit = int(min(64 << 20, max(32 << 20, int(need * 1.5) + (2 << 20))))

    kern = functools.partial(_fused_sim_loss_kernel, n_pair=num_clips)
    clip_lse, rlse_p, clse_p, clsem_p = pl.pallas_call(
        kern,
        out_shape=(
            jax.ShapeDtypeStruct((bt, bv), jnp.float32),      # clip_lse (module l1_simi)
            jax.ShapeDtypeStruct((gj, bt, 1), jnp.float32),   # text-side partial LSEs
            jax.ShapeDtypeStruct((gi, 1, bv), jnp.float32),   # video-side partial col-LSEs
            jax.ShapeDtypeStruct((gi, 1, bv), jnp.float32),   # masked video-side partials
        ),
        grid=(gi, gj),
        in_specs=[
            pl.BlockSpec((tm, h), lambda i, j: (i, 0)),
            pl.BlockSpec((num_clips, h, tbv), lambda i, j: (0, 0, j)),
        ],
        out_specs=[
            pl.BlockSpec((tm, tbv), lambda i, j: (i, j)),
            pl.BlockSpec((1, tm, 1), lambda i, j: (j, i, 0)),
            pl.BlockSpec((1, 1, tbv), lambda i, j: (i, 0, j)),
            pl.BlockSpec((1, 1, tbv), lambda i, j: (i, 0, j)),
        ],
        scratch_shapes=[pltpu.VMEM((num_clips, tm, tbv), jnp.float32)],
        compiler_params=pltpu.CompilerParams(
            dimension_semantics=("parallel", "parallel"),
            vmem_limit_bytes=vmem_limit,
        ),
    )(t_in, v_in)
    return clip_lse, rlse_p, clse_p, clsem_p


# ----------------------------------------------------------------------------
# forward_stage1 (== the full forward for training_stage='stage1')
# ----------------------------------------------------------------------------
def univl_retrieval_forward_stage1(text_embed_l1, video_embed_l1, num_clips,
                                   matmul_dtype=jnp.bfloat16, tile_t=256, tile_v=256):
    clip_lse, rlse_p, clse_p, clsem_p = _l1_sim_and_loss_stats(
        text_embed_l1, video_embed_l1, num_clips,
        matmul_dtype=matmul_dtype, tile_t=tile_t, tile_v=tile_v)

    bt = text_embed_l1.shape[0]
    bv = video_embed_l1.shape[0] // num_clips
    if bt == bv:      # cal_cross=True and square similarity matrix -> MIL-NCE branch
        log_c = jnp.log(jnp.float32(num_clips))
        lt = logsumexp(rlse_p[:, :, 0], axis=0)           # LSE(from_text row)          (B,)
        lv = logsumexp(clse_p[:, 0, :], axis=0) + log_c   # LSE(from_video row)         (B,)
        lvm = logsumexp(clsem_p[:, 0, :], axis=0) + log_c # LSE(masked from_video row)  (B,)
        denom = jnp.logaddexp(lv, lt)                     # log-softmax denominator (2N cols)
        lse_masked = jnp.logaddexp(lvm, lt + NEG)         # lse(x + c) == lse(x) + c
        loss = jnp.mean(denom - lse_masked)               # mean over the marked rows
    else:             # module returns a 0 loss otherwise
        loss = jnp.float32(0.0)

    return {
        "losses": {"level1_similarity_loss": loss},
        "l1_simi": clip_lse,               # reduce_clips('l1') of the (Bt, Bv, C) similarity
    }


# ----------------------------------------------------------------------------
# Pure-JAX reference (mirrors the PyTorch code path) for verification
# ----------------------------------------------------------------------------
def _reference(text_embed_l1, video_embed_l1, num_clips, matmul_dtype):
    # round inputs like the kernel's MXU operands so the comparison isolates the kernel math
    t = text_embed_l1.astype(matmul_dtype).astype(jnp.float32)
    v = video_embed_l1.astype(matmul_dtype).astype(jnp.float32)
    h = t.shape[-1]
    simi = jnp.matmul(v.reshape(-1, num_clips, h), t.T,
                      precision=lax.Precision.HIGHEST).transpose(2, 0, 1)   # (Bt, Bv, C)
    bt, bv, c = simi.shape
    mil = jnp.broadcast_to(simi[:, None, :, :], (bt, c, bv, c)).reshape(bt * c, bv * c)

    mm = jnp.kron(jnp.eye(bt, dtype=jnp.float32), jnp.ones((c, c), jnp.float32))
    from_text = mil + mm * NEG
    from_video = mil.T
    new_sim = jnp.concatenate([from_video, from_text], axis=-1)
    logpt = jax.nn.log_softmax(new_sim, axis=-1)
    mm_cat = jnp.concatenate([mm, jnp.zeros_like(mm)], axis=-1)
    masked = logpt + (1.0 - mm_cat) * NEG
    new_logpt = -logsumexp(masked, axis=-1)
    mark = jnp.arange(bt) * c + c // 2
    loss = new_logpt[mark].mean()

    l1 = logsumexp(simi, axis=-1)
    return loss, l1


if __name__ == "__main__":
    B = 256          # texts == videos -> square sim matrix, MIL-NCE loss branch taken
    NUM_CLIPS = 4
    H = 128

    key = jax.random.PRNGKey(0)
    k_t, k_v = jax.random.split(key)
    # TODO(synk): the BERT text encoder / video encoder (UnivlVideoBase.get_l2_input) are not
    #             re-implemented; deterministic synthetic L1 embeddings stand in for them.
    scale = jnp.float32(H) ** -0.25
    text_embed_l1 = jax.random.normal(k_t, (B, H), dtype=jnp.float32) * scale
    video_embed_l1 = jax.random.normal(k_v, (B * NUM_CLIPS, H), dtype=jnp.float32) * scale

    out = univl_retrieval_forward_stage1(
        text_embed_l1, video_embed_l1, NUM_CLIPS,
        matmul_dtype=jnp.bfloat16,          # bf16 MXU operands, all LSE math stays f32
        tile_t=128, tile_v=128,             # 2x2 grid at this size -> exercises tile combine
    )
    loss = jax.block_until_ready(out["losses"]["level1_similarity_loss"])
    l1_simi = jax.block_until_ready(out["l1_simi"])

    ref_loss, ref_l1 = _reference(text_embed_l1, video_embed_l1, NUM_CLIPS, jnp.bfloat16)
    assert jnp.allclose(loss, ref_loss, rtol=1e-4, atol=1e-3), (float(loss), float(ref_loss))
    assert jnp.allclose(l1_simi, ref_l1, rtol=1e-4, atol=1e-3), float(
        jnp.max(jnp.abs(l1_simi - ref_l1)))

    print("KERNEL_OK")
</pallas_src>

<mosaic_0001>
module attributes {stable_mosaic.version = 11 : i64} {
  func.func @_fused_sim_loss_kernel(%arg0: i32, %arg1: i32, %arg2: memref<128x128xbf16, #tpu.memory_space<vmem>>, %arg3: memref<4x128x128xbf16, #tpu.memory_space<vmem>>, %arg4: memref<128x128xf32, #tpu.memory_space<vmem>>, %arg5: memref<1x128x1xf32, #tpu.memory_space<vmem>>, %arg6: memref<1x1x128xf32, #tpu.memory_space<vmem>>, %arg7: memref<1x1x128xf32, #tpu.memory_space<vmem>>, %arg8: memref<4x128x128xf32, #tpu.memory_space<vmem>>) attributes {dimension_semantics = [#tpu.dimension_semantics<parallel>, #tpu.dimension_semantics<parallel>], iteration_bounds = array<i64: 2, 2>, scalar_prefetch = 0 : i64, scratch_operands = 1 : i64, tpu.core_type = #tpu.core_type<tc>, window_params = [{transform_indices = @transform_0, window_bounds = array<i64: 128, 128>}, {transform_indices = @transform_1, window_bounds = array<i64: 4, 128, 128>}, {transform_indices = @transform_2, window_bounds = array<i64: 128, 128>}, {transform_indices = @transform_3, window_bounds = array<i64: 1, 128, 1>}, {transform_indices = @transform_4, window_bounds = array<i64: 1, 1, 128>}, {transform_indices = @transform_5, window_bounds = array<i64: 1, 1, 128>}]} {
    %c0 = arith.constant 0 : index
    %c0_0 = arith.constant 0 : index
    %0 = vector.load %arg2[%c0, %c0_0] : memref<128x128xbf16, #tpu.memory_space<vmem>>, vector<128x128xbf16>
    %c0_1 = arith.constant 0 : index
    %c0_2 = arith.constant 0 : index
    %c0_3 = arith.constant 0 : index
    %1 = vector.load %arg3[%c0_1, %c0_2, %c0_3] : memref<4x128x128xbf16, #tpu.memory_space<vmem>>, vector<1x128x128xbf16>
    %2 = vector.shape_cast %1 : vector<1x128x128xbf16> to vector<128x128xbf16>
    %cst = arith.constant dense<0.000000e+00> : vector<128x128xf32>
    %3 = tpu.matmul %0, %2, %cst {dimension_numbers = #tpu.dot_dimension_numbers<[1], [0], [0], [1], [0, 0, 1, 1], [], []>} : vector<128x128xbf16>, vector<128x128xbf16>, vector<128x128xf32> -> vector<128x128xf32>
    %c0_4 = arith.constant 0 : index
    %c0_5 = arith.constant 0 : index
    %c0_6 = arith.constant 0 : index
    %4 = vector.load %arg8[%c0_4, %c0_5, %c0_6] : memref<4x128x128xf32, #tpu.memory_space<vmem>>, vector<1x128x128xf32>
    %5 = vector.shape_cast %4 : vector<1x128x128xf32> to vector<128x128xf32>
    %6 = vector.shape_cast %3 : vector<128x128xf32> to vector<1x128x128xf32>
    tpu.vector_store %arg8[%c0_4, %c0_5, %c0_6], %6 {strides = array<i32>} : memref<4x128x128xf32, #tpu.memory_space<vmem>>, vector<1x128x128xf32>,
    %c1 = arith.constant 1 : index
    %c0_7 = arith.constant 0 : index
    %c0_8 = arith.constant 0 : index
    %7 = vector.load %arg3[%c1, %c0_7, %c0_8] : memref<4x128x128xbf16, #tpu.memory_space<vmem>>, vector<1x128x128xbf16>
    %8 = vector.shape_cast %7 : vector<1x128x128xbf16> to vector<128x128xbf16>
    %cst_9 = arith.constant dense<0.000000e+00> : vector<128x128xf32>
    %9 = tpu.matmul %0, %8, %cst_9 {dimension_numbers = #tpu.dot_dimension_numbers<[1], [0], [0], [1], [0, 0, 1, 1], [], []>} : vector<128x128xbf16>, vector<128x128xbf16>, vector<128x128xf32> -> vector<128x128xf32>
    %c1_10 = arith.constant 1 : index
    %c0_11 = arith.constant 0 : index
    %c0_12 = arith.constant 0 : index
    %10 = vector.load %arg8[%c1_10, %c0_11, %c0_12] : memref<4x128x128xf32, #tpu.memory_space<vmem>>, vector<1x128x128xf32>
    %11 = vector.shape_cast %10 : vector<1x128x128xf32> to vector<128x128xf32>
    %12 = vector.shape_cast %9 : vector<128x128xf32> to vector<1x128x128xf32>
    tpu.vector_store %arg8[%c1_10, %c0_11, %c0_12], %12 {strides = array<i32>} : memref<4x128x128xf32, #tpu.memory_space<vmem>>, vector<1x128x128xf32>,
    %c2 = arith.constant 2 : index
    %c0_13 = arith.constant 0 : index
    %c0_14 = arith.constant 0 : index
    %13 = vector.load %arg3[%c2, %c0_13, %c0_14] : memref<4x128x128xbf16, #tpu.memory_space<vmem>>, vector<1x128x128xbf16>
    %14 = vector.shape_cast %13 : vector<1x128x128xbf16> to vector<128x128xbf16>
    %cst_15 = arith.constant dense<0.000000e+00> : vector<128x128xf32>
    %15 = tpu.matmul %0, %14, %cst_15 {dimension_numbers = #tpu.dot_dimension_numbers<[1], [0], [0], [1], [0, 0, 1, 1], [], []>} : vector<128x128xbf16>, vector<128x128xbf16>, vector<128x128xf32> -> vector<128x128xf32>
    %c2_16 = arith.constant 2 : index
    %c0_17 = arith.constant 0 : index
    %c0_18 = arith.constant 0 : index
    %16 = vector.load %arg8[%c2_16, %c0_17, %c0_18] : memref<4x128x128xf32, #tpu.memory_space<vmem>>, vector<1x128x128xf32>
    %17 = vector.shape_cast %16 : vector<1x128x128xf32> to vector<128x128xf32>
    %18 = vector.shape_cast %15 : vector<128x128xf32> to vector<1x128x128xf32>
    tpu.vector_store %arg8[%c2_16, %c0_17, %c0_18], %18 {strides = array<i32>} : memref<4x128x128xf32, #tpu.memory_space<vmem>>, vector<1x128x128xf32>,
    %c3 = arith.constant 3 : index
    %c0_19 = arith.constant 0 : index
    %c0_20 = arith.constant 0 : index
    %19 = vector.load %arg3[%c3, %c0_19, %c0_20] : memref<4x128x128xbf16, #tpu.memory_space<vmem>>, vector<1x128x128xbf16>
    %20 = vector.shape_cast %19 : vector<1x128x128xbf16> to vector<128x128xbf16>
    %cst_21 = arith.constant dense<0.000000e+00> : vector<128x128xf32>
    %21 = tpu.matmul %0, %20, %cst_21 {dimension_numbers = #tpu.dot_dimension_numbers<[1], [0], [0], [1], [0, 0, 1, 1], [], []>} : vector<128x128xbf16>, vector<128x128xbf16>, vector<128x128xf32> -> vector<128x128xf32>
    %c3_22 = arith.constant 3 : index
    %c0_23 = arith.constant 0 : index
    %c0_24 = arith.constant 0 : index
    %22 = vector.load %arg8[%c3_22, %c0_23, %c0_24] : memref<4x128x128xf32, #tpu.memory_space<vmem>>, vector<1x128x128xf32>
    %23 = vector.shape_cast %22 : vector<1x128x128xf32> to vector<128x128xf32>
    %24 = vector.shape_cast %21 : vector<128x128xf32> to vector<1x128x128xf32>
    tpu.vector_store %arg8[%c3_22, %c0_23, %c0_24], %24 {strides = array<i32>} : memref<4x128x128xf32, #tpu.memory_space<vmem>>, vector<1x128x128xf32>,
    %c0_25 = arith.constant 0 : index
    %c0_26 = arith.constant 0 : index
    %c0_27 = arith.constant 0 : index
    %25 = vector.load %arg8[%c0_25, %c0_26, %c0_27] : memref<4x128x128xf32, #tpu.memory_space<vmem>>, vector<1x128x128xf32>
    %26 = vector.shape_cast %25 : vector<1x128x128xf32> to vector<128x128xf32>
    %c1_28 = arith.constant 1 : index
    %c0_29 = arith.constant 0 : index
    %c0_30 = arith.constant 0 : index
    %27 = vector.load %arg8[%c1_28, %c0_29, %c0_30] : memref<4x128x128xf32, #tpu.memory_space<vmem>>, vector<1x128x128xf32>
    %28 = vector.shape_cast %27 : vector<1x128x128xf32> to vector<128x128xf32>
    %29 = arith.maximumf %26, %28 : vector<128x128xf32>
    %c2_31 = arith.constant 2 : index
    %c0_32 = arith.constant 0 : index
    %c0_33 = arith.constant 0 : index
    %30 = vector.load %arg8[%c2_31, %c0_32, %c0_33] : memref<4x128x128xf32, #tpu.memory_space<vmem>>, vector<1x128x128xf32>
    %31 = vector.shape_cast %30 : vector<1x128x128xf32> to vector<128x128xf32>
    %32 = arith.maximumf %29, %31 : vector<128x128xf32>
    %c3_34 = arith.constant 3 : index
    %c0_35 = arith.constant 0 : index
    %c0_36 = arith.constant 0 : index
    %33 = vector.load %arg8[%c3_34, %c0_35, %c0_36] : memref<4x128x128xf32, #tpu.memory_space<vmem>>, vector<1x128x128xf32>
    %34 = vector.shape_cast %33 : vector<1x128x128xf32> to vector<128x128xf32>
    %35 = arith.maximumf %32, %34 : vector<128x128xf32>
    %c0_37 = arith.constant 0 : index
    %c0_38 = arith.constant 0 : index
    %c0_39 = arith.constant 0 : index
    %36 = vector.load %arg8[%c0_37, %c0_38, %c0_39] : memref<4x128x128xf32, #tpu.memory_space<vmem>>, vector<1x128x128xf32>
    %37 = vector.shape_cast %36 : vector<1x128x128xf32> to vector<128x128xf32>
    %38 = arith.subf %37, %35 : vector<128x128xf32>
    %39 = math.exp %38 : vector<128x128xf32>
    %c1_40 = arith.constant 1 : index
    %c0_41 = arith.constant 0 : index
    %c0_42 = arith.constant 0 : index
    %40 = vector.load %arg8[%c1_40, %c0_41, %c0_42] : memref<4x128x128xf32, #tpu.memory_space<vmem>>, vector<1x128x128xf32>
    %41 = vector.shape_cast %40 : vector<1x128x128xf32> to vector<128x128xf32>
    %42 = arith.subf %41, %35 : vector<128x128xf32>
    %43 = math.exp %42 : vector<128x128xf32>
    %44 = arith.addf %39, %43 : vector<128x128xf32>
    %c2_43 = arith.constant 2 : index
    %c0_44 = arith.constant 0 : index
    %c0_45 = arith.constant 0 : index
    %45 = vector.load %arg8[%c2_43, %c0_44, %c0_45] : memref<4x128x128xf32, #tpu.memory_space<vmem>>, vector<1x128x128xf32>
    %46 = vector.shape_cast %45 : vector<1x128x128xf32> to vector<128x128xf32>
    %47 = arith.subf %46, %35 : vector<128x128xf32>
    %48 = math.exp %47 : vector<128x128xf32>
    %49 = arith.addf %44, %48 : vector<128x128xf32>
    %c3_46 = arith.constant 3 : index
    %c0_47 = arith.constant 0 : index
    %c0_48 = arith.constant 0 : index
    %50 = vector.load %arg8[%c3_46, %c0_47, %c0_48] : memref<4x128x128xf32, #tpu.memory_space<vmem>>, vector<1x128x128xf32>
    %51 = vector.shape_cast %50 : vector<1x128x128xf32> to vector<128x128xf32>
    %52 = arith.subf %51, %35 : vector<128x128xf32>
    %53 = math.exp %52 : vector<128x128xf32>
    %54 = arith.addf %49, %53 : vector<128x128xf32>
    %55 = math.log %54 : vector<128x128xf32>
    %56 = arith.addf %35, %55 : vector<128x128xf32>
    %c0_49 = arith.constant 0 : index
    %c0_50 = arith.constant 0 : index
    %57 = vector.load %arg4[%c0_49, %c0_50] : memref<128x128xf32, #tpu.memory_space<vmem>>, vector<128x128xf32>
    tpu.vector_store %arg4[%c0_49, %c0_50], %56 {strides = array<i32>} : memref<128x128xf32, #tpu.memory_space<vmem>>, vector<128x128xf32>,
    %c128_i32 = arith.constant 128 : i32
    %58 = arith.muli %arg0, %c128_i32 : i32
    %59 = tpu.iota {dimensions = array<i32: 0>} : vector<128x128xi32>
    %60 = vector.broadcast %58 : i32 to vector<128x128xi32>
    %61 = arith.addi %60, %59 : vector<128x128xi32>
    %c128_i32_51 = arith.constant 128 : i32
    %62 = arith.muli %arg1, %c128_i32_51 : i32
    %63 = tpu.iota {dimensions = array<i32: 1>} : vector<128x128xi32>
    %64 = vector.broadcast %62 : i32 to vector<128x128xi32>
    %65 = arith.addi %64, %63 : vector<128x128xi32>
    %66 = arith.cmpi eq, %61, %65 : vector<128x128xi32>
    %67 = arith.extui %66 : vector<128x128xi1> to vector<128x128xi32>
    %68 = arith.sitofp %67 : vector<128x128xi32> to vector<128x128xf32>
    %cst_52 = arith.constant -9.99999995E+11 : f32
    %69 = vector.broadcast %cst_52 : f32 to vector<128x128xf32>
    %70 = arith.mulf %68, %69 : vector<128x128xf32>
    %71 = arith.addf %56, %70 : vector<128x128xf32>
    %cst_53 = arith.constant dense<0xFF800000> : vector<128xf32>
    %72 = vector.multi_reduction <maximumf>, %71, %cst_53 [1] : vector<128x128xf32> to vector<128xf32>
    %73 = vector.shape_cast %72 : vector<128xf32> to vector<128x1xf32>
    %74 = vector.broadcast %73 : vector<128x1xf32> to vector<128x128xf32>
    %75 = arith.subf %71, %74 : vector<128x128xf32>
    %76 = math.exp %75 : vector<128x128xf32>
    %cst_54 = arith.constant dense<0.000000e+00> : vector<128xf32>
    %77 = vector.multi_reduction <add>, %76, %cst_54 [1] : vector<128x128xf32> to vector<128xf32>
    %78 = vector.shape_cast %77 : vector<128xf32> to vector<128x1xf32>
    %79 = math.log %78 : vector<128x1xf32>
    %80 = arith.addf %73, %79 : vector<128x1xf32>
    %81 = vector.shape_cast %80 : vector<128x1xf32> to vector<1x128x1xf32>
    %c0_55 = arith.constant 0 : index
    %c0_56 = arith.constant 0 : index
    %c0_57 = arith.constant 0 : index
    %82 = vector.load %arg5[%c0_55, %c0_56, %c0_57] : memref<1x128x1xf32, #tpu.memory_space<vmem>>, vector<1x128x1xf32>
    tpu.vector_store %arg5[%c0_55, %c0_56, %c0_57], %81 {strides = array<i32>} : memref<1x128x1xf32, #tpu.memory_space<vmem>>, vector<1x128x1xf32>,
    %c2_58 = arith.constant 2 : index
    %c0_59 = arith.constant 0 : index
    %c0_60 = arith.constant 0 : index
    %83 = vector.load %arg8[%c2_58, %c0_59, %c0_60] : memref<4x128x128xf32, #tpu.memory_space<vmem>>, vector<1x128x128xf32>
    %84 = vector.shape_cast %83 : vector<1x128x128xf32> to vector<128x128xf32>
    %cst_61 = arith.constant dense<0xFF800000> : vector<128xf32>
    %85 = vector.multi_reduction <maximumf>, %84, %cst_61 [0] : vector<128x128xf32> to vector<128xf32>
    %86 = vector.shape_cast %85 : vector<128xf32> to vector<1x128xf32>
    %87 = vector.broadcast %86 : vector<1x128xf32> to vector<128x128xf32>
    %88 = arith.subf %84, %87 : vector<128x128xf32>
    %89 = math.exp %88 : vector<128x128xf32>
    %cst_62 = arith.constant dense<0.000000e+00> : vector<128xf32>
    %90 = vector.multi_reduction <add>, %89, %cst_62 [0] : vector<128x128xf32> to vector<128xf32>
    %91 = vector.shape_cast %90 : vector<128xf32> to vector<1x128xf32>
    %92 = math.log %91 : vector<1x128xf32>
    %93 = arith.addf %86, %92 : vector<1x128xf32>
    %94 = vector.shape_cast %93 : vector<1x128xf32> to vector<1x1x128xf32>
    %c0_63 = arith.constant 0 : index
    %c0_64 = arith.constant 0 : index
    %c0_65 = arith.constant 0 : index
    %95 = vector.load %arg6[%c0_63, %c0_64, %c0_65] : memref<1x1x128xf32, #tpu.memory_space<vmem>>, vector<1x1x128xf32>
    tpu.vector_store %arg6[%c0_63, %c0_64, %c0_65], %94 {strides = array<i32>} : memref<1x1x128xf32, #tpu.memory_space<vmem>>, vector<1x1x128xf32>,
    %cst_66 = arith.constant 1.000000e+00 : f32
    %96 = vector.broadcast %cst_66 : f32 to vector<128x128xf32>
    %97 = arith.subf %96, %68 : vector<128x128xf32>
    %cst_67 = arith.constant -9.99999995E+11 : f32
    %98 = vector.broadcast %cst_67 : f32 to vector<128x128xf32>
    %99 = arith.mulf %97, %98 : vector<128x128xf32>
    %100 = arith.addf %84, %99 : vector<128x128xf32>
    %cst_68 = arith.constant dense<0xFF800000> : vector<128xf32>
    %101 = vector.multi_reduction <maximumf>, %100, %cst_68 [0] : vector<128x128xf32> to vector<128xf32>
    %102 = vector.shape_cast %101 : vector<128xf32> to vector<1x128xf32>
    %103 = vector.broadcast %102 : vector<1x128xf32> to vector<128x128xf32>
    %104 = arith.subf %100, %103 : vector<128x128xf32>
    %105 = math.exp %104 : vector<128x128xf32>
    %cst_69 = arith.constant dense<0.000000e+00> : vector<128xf32>
    %106 = vector.multi_reduction <add>, %105, %cst_69 [0] : vector<128x128xf32> to vector<128xf32>
    %107 = vector.shape_cast %106 : vector<128xf32> to vector<1x128xf32>
    %108 = math.log %107 : vector<1x128xf32>
    %109 = arith.addf %102, %108 : vector<1x128xf32>
    %110 = vector.shape_cast %109 : vector<1x128xf32> to vector<1x1x128xf32>
    %c0_70 = arith.constant 0 : index
    %c0_71 = arith.constant 0 : index
    %c0_72 = arith.constant 0 : index
    %111 = vector.load %arg7[%c0_70, %c0_71, %c0_72] : memref<1x1x128xf32, #tpu.memory_space<vmem>>, vector<1x1x128xf32>
    tpu.vector_store %arg7[%c0_70, %c0_71, %c0_72], %110 {strides = array<i32>} : memref<1x1x128xf32, #tpu.memory_space<vmem>>, vector<1x1x128xf32>,
    return
  }
  func.func @transform_0(%arg0: i32, %arg1: i32) -> (i32, i32) {
    %c0_i32 = arith.constant 0 : i32
    %c0_i32_0 = arith.constant 0 : i32
    return %arg0, %c0_i32 : i32, i32
  }
  func.func @transform_1(%arg0: i32, %arg1: i32) -> (i32, i32, i32) {
    %c0_i32 = arith.constant 0 : i32
    %c0_i32_0 = arith.constant 0 : i32
    %c0_i32_1 = arith.constant 0 : i32
    return %c0_i32, %c0_i32_0, %arg1 : i32, i32, i32
  }
  func.func @transform_2(%arg0: i32, %arg1: i32) -> (i32, i32) {
    %c0_i32 = arith.constant 0 : i32
    return %arg0, %arg1 : i32, i32
  }
  func.func @transform_3(%arg0: i32, %arg1: i32) -> (i32, i32, i32) {
    %c0_i32 = arith.constant 0 : i32
    %c0_i32_0 = arith.constant 0 : i32
    return %arg1, %arg0, %c0_i32 : i32, i32, i32
  }
  func.func @transform_4(%arg0: i32, %arg1: i32) -> (i32, i32, i32) {
    %c0_i32 = arith.constant 0 : i32
    %c0_i32_0 = arith.constant 0 : i32
    return %arg0, %c0_i32, %arg1 : i32, i32, i32
  }
  func.func @transform_5(%arg0: i32, %arg1: i32) -> (i32, i32, i32) {
    %c0_i32 = arith.constant 0 : i32
    %c0_i32_0 = arith.constant 0 : i32
    return %arg0, %c0_i32, %arg1 : i32, i32, i32
  }
}

</mosaic_0001>

<bundles_post_ra>
// kernel: tpu_custom_call.1
= control target key start
LH: loop header
LB: loop body
LE: loop exit
PB: predicated region body
PF: predicated region fallthrough
CT: control target
= control target key end

     0   :  { %s5155_s0 = inlined_call_operand.hbm [shape: bf16[256,128], index: 0, kind: input, shape index: {}]   ;;  %s5156_s1 = inlined_call_operand.hbm [shape: bf16[4,128,256], index: 1, kind: input, shape index: {}]   ;;  %s5157_s2 = inlined_call_operand.hbm [shape: f32[256,256], index: 2, kind: output, shape index: {0}]   ;;  %s5158_s3 = inlined_call_operand.vmem [shape: f32[2,256,1], index: 3, kind: output, shape index: {1}]   ;;  %s5159_s4 = inlined_call_operand.hbm [shape: f32[2,1,256], index: 4, kind: output, shape index: {2}]   ;;  %s5160_s5 = inlined_call_operand.hbm [shape: f32[2,1,256], index: 5, kind: output, shape index: {3}]  }
   0x1   :  { %5236 = sst [smem:[#allocation92_spill]] %s5155_s0 }
   0x2   :  { %5237 = sst [smem:[#allocation93_spill]] %s5156_s1 }
   0x3   :  { %5238 = sst [smem:[#allocation94_spill]] %s5157_s2 }
   0x4   :  { %5239 = sst [smem:[#allocation95_spill]] %s5158_s3 }
   0x5   :  { %5240 = sst [smem:[#allocation96_spill]] %s5159_s4 }
   0x6   :  { %5241 = sst [smem:[#allocation97_spill]] %s5160_s5 }
   0x7   :  { %11 = vsyncpa [#allocation4], 0 }
   0x8   :  { %13 = vsyncpa [#allocation4 + $0x1], 0 }
   0x9   :  { %14 = vsyncpa [#allocation7], 0 }
   0xa   :  { %16 = vsyncpa [#allocation7 + $0x1], 0 }
   0xb   :  { %17 = vsyncpa [#allocation5], 0 }
   0xc   :  { %19 = vsyncpa [#allocation5 + $0x1], 0 }
   0xd   :  { %20 = vsyncpa [#allocation10], 0 }
   0xe   :  { %22 = vsyncpa [#allocation10 + $0x1], 0  ;;  %s3475_s18 = smov 0   ;;  %s3477_s19 = smov 0  }
   0xf   :  { %s3479_s20 = smov 0   ;;  %s3481_s21 = smov 0  }
  0x10   :  { %s3483_s22 = smov 0   ;;  %s3485_s23 = smov 0  }
  0x11   :  { %s3487_s24 = smov 0   ;;  %s3489_s25 = smov 0  }
  0x12   :  { %s3491_s26 = smov 0   ;;  %s3493_s27 = smov 0  }
  0x13   :  { %s3495_s28 = smov 0   ;;  %s3497_s29 = smov 0  }
  0x14   :  { %s3499_s30 = smov 0   ;;  %s3501_s6 = smov 0  }
  0x15 LB: > { %5242 = sst [smem:[#allocation16_spill]] %s3411_s26  ;;  %s3544_s7 = sadd.s32 4294967295, %s3431_s6   ;;  %s3431_s6 = sphi %s3501_s6, %s28_s6   ;;  %s3427_s30 = sphi %s3499_s30, %s5484_s30   ;;  %s3423_s29 = sphi %s3497_s29, %s5473_s29   ;;  %s3419_s28 = sphi %s3495_s28, %s5472_s28   ;;  %s3415_s27 = sphi %s3493_s27, %s5471_s27   ;;  %s3411_s26 = sphi %s3491_s26, %s5470_s26   ;;  %s3407_s25 = sphi %s3489_s25, %s5483_s25   ;;  %s3403_s24 = sphi %s3487_s24, %s5482_s24   ;;  %s3399_s23 = sphi %s3485_s23, %s5481_s23   ;;  %s3395_s22 = sphi %s3483_s22, %s5480_s22   ;;  %s3391_s21 = sphi %s3481_s21, %s5479_s21   ;;  %s3387_s20 = sphi %s3479_s20, %s5478_s20   ;;  %s3383_s19 = sphi %s3477_s19, %s5477_s19   ;;  %s3379_s18 = sphi %s3475_s18, %s5476_s18  }
  0x16   : > { %5243 = sst [smem:[#allocation17_spill]] %s3423_s29  ;;  %p54_p0 = scmp.ne.s32.totalorder %s3411_s26, %s3407_s25 }
  0x17   : > { %5244 = sst [smem:[#allocation18_spill]] %s3427_s30  ;;  %p5163_p1 = scmp.eq.s32.totalorder %s3431_s6, 0 }
  0x18   : > { %5245 = sst [smem:[#allocation19_spill]] %s3544_s7  ;;  %p60_p2 = scmp.ne.s32.totalorder %s3407_s25, %s3403_s24 }
  0x19   : > { %p5162_p3 = scmp.eq.s32.totalorder %s3544_s7, 0  ;;  %p56_p5 = por %p5163_p1, %p54_p0 }
  0x1a   : > { %p5161_p7 = scmp.lt.s32.totalorder %s3431_s6, 4  ;;  %s222_s11 = sand.u32 1, %s3411_s26  }
  0x1b   : > { %p3558_p6 = por %p5162_p3, %p60_p2  ;;  %s2487_s12 = sshll.u32 %s3427_s30, 10 }
  0x1c   : > { %s2359_s13 = sshll.u32 %s222_s11, 6  ;;  %s5247_s0 = sld [smem:[#allocation92_spill]] }
  0x1d   : > { %s5246_s10 = scalar_select %p3558_p6, 1, 0 }
  0x1e   : > { %s226_s17 = scalar_lea.vmem [#allocation3], %s2359_s13  ;;  %p3572_p8 = pnand %p5161_p7, %p56_p5 }
  0x1f   : > { %s233_s24 = sshll.u32 %s226_s17, 4  ;;  %s3578_s8 = scalar_lea.sflag [#allocation4], %s222_s11  ;;  %s3576_s24 = int_to_ptr.vmem [resolvable:$true] %s233_s24 }
  0x20   : > { %p3163_p10 = pneg %p3572_p8 }
  0x22   : > { %s3568_s16 = scalar_lea.hbm %s5247_s0, %s2487_s12  ;;  %s3166_s15 = scalar_lea.hbm %s5247_s0, 2048 }
  0x23   : > { %s3161_s14 = scalar_lea.hbm %s3568_s16, 1024  ;;  %p3167_p13 = scmp.lt.u32.totalorder %s3568_s16, %s5247_s0 }
  0x24   : > { %p3162_p9 = scmp.ne.s32.totalorder %s3568_s16, %s3161_s14  ;;  %p3168_p0 = scmp.lt.u32.totalorder %s3166_s15, %s3161_s14 }
  0x25   : > { %p3170_p5 = scmp.lt.u32.totalorder %s3161_s14, %s3568_s16 }
  0x26   : > { %p3164_p11 = pnand %p3163_p10, %p3162_p9  ;;  %p3169_p2 = por %p3168_p0, %p3167_p13 }
  0x28   : > { %p3165_p12 = pneg %p3164_p11  ;;  %p3171_p7 = por %p3170_p5, %p3169_p2 }
  0x2a   : > { %p3172_p4 = pnand %p3171_p7, %p3165_p12 }
  0x2c   : > { %3175 = shalt.err (!%p3172_p4)
}
  0x2d   : > { %s3176_s11 = scalar_lea.vmem %s3576_s24, 1024  ;;  %s3433_s12 = smov [#allocation3]  }
  0x2e   : > { %p3177_p9 = scmp.ne.s32.totalorder %s3576_s24, %s3176_s11  ;;  %s3181_s13 = sshll.u32 %s3433_s12, 4  ;;  %s3182_s13 = int_to_ptr.vmem [resolvable:$false] %s3181_s13 }
  0x2f   : > { %s3183_s3 = scalar_lea.vmem %s3182_s13, 2048  ;;  %p3184_p1 = scmp.lt.s32.totalorder %s3576_s24, %s3182_s13 }
  0x30   : > { %p3179_p11 = pnand %p3177_p9, %p3163_p10  ;;  %p3185_p13 = scmp.lt.s32.totalorder %s3183_s3, %s3176_s11 }
  0x32   : > { %p3180_p3 = pneg %p3179_p11  ;;  %p3186_p0 = por %p3185_p13, %p3184_p1 }
  0x34   : > { %p3187_p2 = pnand %p3186_p0, %p3180_p3 }
  0x36   : > { %3190 = shalt.err (!%p3187_p2)
}
  0x37   : > { %s5164_s14 = smov 64   ;;  %s5165_s15 = smov 4  }
  0x38   : > { %2694 = dma.hbm_to_vmem [thread:$0]  (!%p3572_p8), %s3568_s16, 1024, %s3576_s24, %s3578_s8, %s5164_s14, %s5164_s14, %s5165_s15  }
  0x39   : > { %p2364_p1 = scmp.ge.s32.totalorder %s3431_s6, 1  ;;  %p261_p3 = scmp.lt.s32.totalorder %s3431_s6, 5 }
  0x3a   : > { %s37_s12 = sadd.s32 1, %s3423_s29  ;;  %s73_s13 = sadd.s32 1, %s3399_s23 }
  0x3b   : > { %p3611_p4 = pnand %p2364_p1, %p261_p3  ;;  %p38_p7 = scmp.ge.s32.totalorder %s37_s12, 2 }
  0x3c   : > { %p80_p10 = scmp.ne.s32.totalorder %s3399_s23, %s3395_s22  ;;  %p86_p12 = scmp.ne.s32.totalorder %s3395_s22, %s3391_s21 }
  0x3d   : > { %s101_s9 = sadd.s32 1, %s3387_s20  ;;  %s5486_s12 = smov (%p38_p7, %s37_s12), 0 }
  0x3e   : > { %5250 = sst [smem:[#allocation20_spill]] %s5486_s12  ;;  %s5251_s8 = sadd.s32 1, %s3427_s30 }
  0x3f   : > { %s5488_s8 = smov (!%p38_p7, %s5251_s8), %s3427_s30  ;;  %s70_s16 = ssub.s32 %s3423_s29, %s5486_s12 }
  0x40   : > { %p5252_p8 = scmp.eq.s32.totalorder %s3431_s6, 0  ;;  %p42_p9 = scmp.ge.s32.totalorder %s5488_s8, 2 }
  0x41   : > { %p71_p11 = scmp.eq.s32.totalorder %s70_s16, 0  ;;  %p5254_p13 = scmp.eq.s32.totalorder %s3544_s7, 0 }
  0x42   : > { %p3632_p5 = por %p80_p10, %p5252_p8  ;;  %p111_p2 = scmp.ne.s32.totalorder %s3387_s20, %s3383_s19 }
  0x43   : > { %p3638_p0 = por %p86_p12, %p5254_p13  ;;  %s5490_s8 = smov (%p42_p9, %s5488_s8), 0 }
  0x44   : > { %5256 = sst [smem:[#allocation21_spill]] %s5490_s8  ;;  %s44_s14 = ssub.s32 %s3427_s30, %s5490_s8 }
  0x45   : > { %s5255_s21 = scalar_select %p3638_p0, 1, 0 }
  0x46   : > { %s3647_s3 = scalar_select %p71_p11, %s3399_s23, %s73_s13  }
  0x47   : > { %p5258_p1 = scmp.eq.s32.totalorder %s3544_s7, 3  ;;  %p45_p7 = scmp.eq.s32.totalorder %s44_s14, 0 }
  0x48   : > { %5257 = sst [smem:[#allocation22_spill]] %s3647_s3  ;;  %s98_s11 = sor.u32 %s70_s16, %s44_s14 }
  0x49   : > { %p3653_p3 = por %p5258_p1, %p111_p2  ;;  %p99_p10 = scmp.eq.s32.totalorder %s98_s11, 0 }
  0x4a   : > { %p117_p12 = scmp.ne.s32.totalorder %s3383_s19, %s3379_s18  ;;  %s5261_s0 = sadd.s32 1, %s3411_s26 }
  0x4b   : > { %s5259_s15 = scalar_select %p3653_p3, 1, 0 }
  0x4c   : > { %s3662_s12 = scalar_select %p45_p7, %s3411_s26, %s5261_s0  }
  0x4d   : > { %5260 = sst [smem:[#allocation23_spill]] %s5259_s15  ;;  %s5263_s5 = sadd.s32 4294967294, %s3431_s6  }
  0x4e   : > { %5262 = sst [smem:[#allocation24_spill]] %s3662_s12  ;;  %p118_p8 = scmp.eq.s32.totalorder %s5263_s5, 3 }
  0x4f   : > { %s3665_s2 = scalar_select %p99_p10, %s3387_s20, %s101_s9  }
  0x50   : > { %s243_s13 = sand.u32 1, %s3399_s23   ;;  %p3670_p9 = por %p118_p8, %p117_p12 }
  0x51   : > { %s2362_s8 = sshll.u32 %s243_s13, 8  ;;  %s2363_s3 = sshll.u32 %s3423_s29, 6 }
  0x52   : > { %s5264_s30 = scalar_select %p3670_p9, 1, 0 }
  0x53   : > { %s247_s4 = scalar_lea.vmem [#allocation6], %s2362_s8  ;;  %s5265_s1 = sld [smem:[#allocation93_spill]] }
  0x54   : > { %s253_s15 = sshll.u32 %s247_s4, 4  ;;  %p5266_p11 = scmp.lt.s32.totalorder %s3431_s6, 4  ;;  %s3680_s15 = int_to_ptr.vmem [resolvable:$true] %s253_s15 }
  0x55   : > { %s3690_s4 = scalar_lea.sflag [#allocation7], %s243_s13 }
  0x56   : > { %p3686_p13 = pnand %p5266_p11, %p3632_p5 }
  0x58   : > { %p3193_p1 = pneg %p3686_p13 }
  0x59   : > { %s3678_s11 = scalar_lea.hbm %s5265_s1, %s2363_s3  ;;  %s3196_s8 = scalar_lea.hbm %s5265_s1, 8192 }
  0x5a   : > { %s3191_s5 = scalar_lea.hbm %s3678_s11, 4096  ;;  %p3197_p5 = scmp.lt.u32.totalorder %s3678_s11, %s5265_s1 }
  0x5b   : > { %p3192_p2 = scmp.ne.s32.totalorder %s3678_s11, %s3191_s5  ;;  %p3198_p12 = scmp.lt.u32.totalorder %s3196_s8, %s3191_s5 }
  0x5c   : > { %p3200_p11 = scmp.lt.u32.totalorder %s3191_s5, %s3678_s11 }
  0x5d   : > { %p3194_p7 = pnand %p3193_p1, %p3192_p2  ;;  %p3199_p8 = por %p3198_p12, %p3197_p5 }
  0x5f   : > { %p3195_p10 = pneg %p3194_p7  ;;  %p3201_p9 = por %p3200_p11, %p3199_p8 }
  0x61   : > { %p3202_p3 = pnand %p3201_p9, %p3195_p10 }
  0x63   : > { %3205 = shalt.err (!%p3202_p3)
}
  0x64   : > { %s3206_s3 = scalar_lea.vmem %s3680_s15, 4096  ;;  %s3436_s13 = smov [#allocation6]  }
  0x65   : > { %p3207_p2 = scmp.ne.s32.totalorder %s3680_s15, %s3206_s3  ;;  %s3211_s14 = sshll.u32 %s3436_s13, 4  ;;  %s3212_s14 = int_to_ptr.vmem [resolvable:$false] %s3211_s14 }
  0x66   : > { %s3213_s7 = scalar_lea.vmem %s3212_s14, 8192  ;;  %p3214_p6 = scmp.lt.s32.totalorder %s3680_s15, %s3212_s14 }
  0x67   : > { %p3209_p7 = pnand %p3207_p2, %p3193_p1  ;;  %p3215_p5 = scmp.lt.s32.totalorder %s3213_s7, %s3206_s3 }
  0x69   : > { %p3210_p0 = pneg %p3209_p7  ;;  %p3216_p12 = por %p3215_p5, %p3214_p6 }
  0x6b   : > { %p3217_p8 = pnand %p3216_p12, %p3210_p0 }
  0x6d   : > { %3220 = shalt.err (!%p3217_p8)
}
  0x6e   : > { %s3437_s5 = smov 128   ;;  %s5268_s9 = smov 4  }
  0x6f   : > { %s5269_s8 = smov 64   ;;  %265 = sbr.rel (%p3611_p4) target bundleno = 862 (0x35e), region = 28 }
  0x70   : > { %2697 = dma.hbm_to_vmem [thread:$0]  (!%p3686_p13), %s3678_s11, 4096, %s3680_s15, %s3690_s4, %s3437_s5, %s5269_s8, %s5268_s9  }
  0x76   : > { %s267_s16 = sand.u32 1, %s3407_s25   ;;  %p5270_p6 = scmp.ne.s32.totalorder %s5246_s10, 0 }
  0x77   : > { %s2365_s24 = sshll.u32 %s267_s16, 6  ;;  %s268_s3 = scalar_lea.sflag [#allocation4], %s267_s16 }
  0x78   : > { %s3723_s13 = scalar_lea.vmem [#allocation3], %s2365_s24 }
  0x79   : > { %3362 = dma.done.wait (%p5270_p6), %s268_s3, 1024  }
  0x7a   : > { %3364 = vsyncadd (%p5270_p6), %s268_s3, 4294966272  ;;  %s276_s0 = sand.u32 1, %s3395_s22   ;;  %p5271_p4 = scmp.ne.s32.totalorder %s5255_s21, 0 }
  0x7b   : > { %s2366_s14 = sshll.u32 %s276_s0, 8  ;;  %s277_s15 = scalar_lea.sflag [#allocation7], %s276_s0 }
  0x7c   : > { %s3730_s11 = scalar_lea.vmem [#allocation6], %s2366_s14 }
  0x7d   : > { %3366 = dma.done.wait (%p5271_p4), %s277_s15, 4096  }
  0x7e   : > { %3368 = vsyncadd (%p5271_p4), %s277_s15, 4294963200  ;;  %v2829_v0 = vld [vmem:[%s3730_s11] sm:$0xff]   ;;  %v2831_v2 = vld [vmem:[%s3730_s11 + $0x8] sm:$0xff]   ;;  %v1537_v40 = vlaneseq  ;;  %s2459_s10 = sshll.u32 %s3419_s28, 7  ;;  %s2460_s17 = sshll.u32 %s3415_s27, 7 }
  0x7f   : > { %v2830_v1 = vld [vmem:[%s3730_s11 + $0x40] sm:$0xff]   ;;  %2553 = vmatprep.subr.bf16.mxu0 %v2829_v0  ;;  %v2832_v3 = vld [vmem:[%s3730_s11 + $0x48] sm:$0xff]   ;;  %v2833_v4 = vld [vmem:[%s3730_s11 + $0x10] sm:$0xff]   ;;  %v3799_v43 = vstv %s2459_s10  ;;  %s4711_s21 = sand.u32 1, %s3383_s19   ;;  %s5456_s8 = sld [smem:[#allocation19_spill]] }
  0x80   : > { %2585 = vmatprep.subr.bf16.mxu1 %v2830_v1  ;;  %2554 = vmatpush3.bf16.msra.mxu0 %v2829_v0  ;;  %v2834_v5 = vld [vmem:[%s3730_s11 + $0x50] sm:$0xff]   ;;  %v2835_v6 = vld [vmem:[%s3730_s11 + $0x18] sm:$0xff]   ;;  %v2837_v8 = vld [vmem:[%s3730_s11 + $0x20] sm:$0xff]   ;;  %v3794_v41 = vshrl.u32 %v1537_v40, 7  ;;  %v1573_v44 = vand.u32 127, %v1537_v40  ;;  %v1574_v45 = vstv %s2460_s17  ;;  %s2367_s4 = sshll.u32 %s4711_s21, 7 }
  0x81   : > { %2586 = vmatpush3.bf16.msra.mxu1 %v2830_v1  ;;  %2555 = vmatprep.subr.bf16.mxu0 %v2831_v2  ;;  %v2836_v7 = vld [vmem:[%s3730_s11 + $0x58] sm:$0xff]   ;;  %v2838_v9 = vld [vmem:[%s3730_s11 + $0x60] sm:$0xff]   ;;  %v2839_v10 = vld [vmem:[%s3730_s11 + $0x28] sm:$0xff]   ;;  %s4743_s7 = scalar_lea.vmem [#allocation8], %s2367_s4  ;;  %s322_s5 = scalar_lea.vmem [#allocation9], %s4711_s21 }
  0x82   : > { %2587 = vmatprep.subr.bf16.mxu1 %v2832_v3  ;;  %v3748_v11 = vld [vmem:[%s3723_s13] sm:$0xff]   ;;  %v2840_v12 = vld [vmem:[%s3730_s11 + $0x68] sm:$0xff]   ;;  %v2841_v13 = vld [vmem:[%s3730_s11 + $0x30] sm:$0xff]   ;;  %v1540_v42 = vadd.s32 16, %v3794_v41  ;;  %v3814_v53 = vadd.s32 %v1574_v45, %v1573_v44  ;;  %v1541_v54 = vadd.s32 24, %v3794_v41  ;;  %v1539_v55 = vadd.s32 8, %v3794_v41 }
  0x83   : > { %2569 = vmatprep.mubr.bf16.mxu0 %v3748_v11  ;;  %2601 = vmatprep.mubr.bf16.mxu1 %v3748_v11  ;;  %v2842_v14 = vld [vmem:[%s3730_s11 + $0x70] sm:$0xff]   ;;  %v2843_v15 = vld [vmem:[%s3730_s11 + $0x38] sm:$0xff]   ;;  %v2847_v17 = vld [vmem:[%s3730_s11 + $0x80] sm:$0xff]   ;;  %v1555_v59 = vadd.s32 %v3799_v43, %v3794_v41  ;;  %v1544_v1 = vadd.s32 48, %v3794_v41  ;;  %v1550_v40 = vadd.s32 96, %v3794_v41  ;;  %s5233_s9 = scalar_lea.vmem [#allocation11], %s4711_s21 }
  0x84   : > { %2556 = vmatpush3.bf16.msra.mxu0 %v2831_v2  ;;  %v2844_v16 = vld [vmem:[%s3730_s11 + $0x78] sm:$0xff]   ;;  %v2848_v18 = vld [vmem:[%s3730_s11 + $0xc0] sm:$0xff]   ;;  %v3760_v19 = vld [vmem:[%s3723_s13 + $0x8] sm:$0xff]   ;;  %v1557_v49 = vadd.s32 %v3799_v43, %v1540_v42  ;;  %v1558_v63 = vadd.s32 %v3799_v43, %v1541_v54  ;;  %v1556_v0 = vadd.s32 %v3799_v43, %v1539_v55  ;;  %v1551_v55 = vadd.s32 104, %v3794_v41  ;;  %s5457_s16 = sld [smem:[#allocation23_spill]]  ;;  %s2481_s24 = sshll.u32 %s3419_s28, 1 }
  0x85   : > { %2588 = vmatpush3.bf16.msra.mxu1 %v2832_v3  ;;  %2557 = vmatprep.subr.bf16.mxu0 %v2833_v4  ;;  %v2849_v20 = vld [vmem:[%s3730_s11 + $0x88] sm:$0xff]   ;;  %v3765_v22 = vld [vmem:[%s3723_s13 + $0x10] sm:$0xff]   ;;  %v2852_v25 = vld [vmem:[%s3723_s13 + $0x18] sm:$0xff]   ;;  %vm1576_vm1 = vcmp.eq.s32.totalorder %v1555_v59, %v3814_v53  ;;  %s2136_s3 = sadd.s32 %s3415_s27, %s2481_s24  ;;  %s2099_s0 = sand.u32 1, %s5456_s8  }
  0x86   : > { %2589 = vmatprep.subr.bf16.mxu1 %v2834_v5  ;;  %v2850_v21 = vld [vmem:[%s3730_s11 + $0xc8] sm:$0xff]   ;;  %v2853_v23 = vld [vmem:[%s3730_s11 + $0x90] sm:$0xff]   ;;  %v2855_v26 = vld [vmem:[%s3730_s11 + $0x98] sm:$0xff]   ;;  %vm1578_vm0 = vcmp.eq.s32.totalorder %v1557_v49, %v3814_v53  ;;  %vm1579_vm2 = vcmp.eq.s32.totalorder %v1558_v63, %v3814_v53  ;;  %vm1577_vm3 = vcmp.eq.s32.totalorder %v1556_v0, %v3814_v53  ;;  %s2482_s14 = sshll.u32 %s2136_s3, 4  ;;  %s5458_s10 = sld [smem:[#allocation96_spill]] }
  0x87   : > { %v2854_v24 = vld [vmem:[%s3730_s11 + $0xd0] sm:$0xff]   ;;  %v2856_v27 = vld [vmem:[%s3730_s11 + $0xd8] sm:$0xff]   ;;  %v2857_v28 = vld [vmem:[%s3723_s13 + $0x20] sm:$0xff]   ;;  %s2140_s4 = sshll.u32 %s322_s5, 4  ;;  %s5459_s29 = sld [smem:[#allocation97_spill]]  ;;  %s4960_s4 = int_to_ptr.vmem [resolvable:$true] %s2140_s4 }
  0x88   : > { %2558 = vmatpush3.bf16.msra.mxu0 %v2833_v4  ;;  %v2859_v29 = vld [vmem:[%s3730_s11 + $0xa0] sm:$0xff]   ;;  %v2858_v31 = vld [vmem:[%s3723_s13 + $0x28] sm:$0xff]   ;;  %v2863_v34 = vld [vmem:[%s3723_s13 + $0x30] sm:$0xff]   ;;  %s4965_s8 = scalar_lea.sflag [#allocation10], %s2099_s0  ;;  %s3221_s3 = scalar_lea.vmem %s4960_s4, 16 }
  0x89   : > { %2590 = vmatpush3.bf16.msra.mxu1 %v2834_v5  ;;  %2559 = vmatprep.subr.bf16.mxu0 %v2835_v6  ;;  %v2860_v30 = vld [vmem:[%s3730_s11 + $0xe0] sm:$0xff]   ;;  %v2861_v32 = vld [vmem:[%s3730_s11 + $0xa8] sm:$0xff]   ;;  %v2865_v35 = vld [vmem:[%s3730_s11 + $0xb0] sm:$0xff]   ;;  %v3438_v5 = vmov 0.0   ;;  %p3222_p0 = scmp.ne.s32.totalorder %s4960_s4, %s3221_s3 }
  0x8a   : > { %2591 = vmatprep.subr.bf16.mxu1 %v2836_v7  ;;  %v2862_v33 = vld [vmem:[%s3730_s11 + $0xe8] sm:$0xff]   ;;  %v2866_v36 = vld [vmem:[%s3730_s11 + $0xf0] sm:$0xff]   ;;  %v2864_v37 = vld [vmem:[%s3723_s13 + $0x38] sm:$0xff]   ;;  %s2488_s13 = sshll.u32 %s3419_s28, 5  ;;  %p5461_p3 = scmp.ne.s32.totalorder %s5457_s16, 0 }
  0x8b   : > { %v2867_v38 = vld [vmem:[%s3730_s11 + $0xb8] sm:$0xff]   ;;  %s4963_s24 = sadd.s32 %s3415_s27, %s2488_s13 }
  0x8c   : > { %2560 = vmatpush3.bf16.msra.mxu0 %v2835_v6  ;;  %v2868_v39 = vld [vmem:[%s3730_s11 + $0xf8] sm:$0xff]   ;;  %v3844_v6 = vsel %vm1578_vm0, 1.0, %v3438_v5  ;;  %s4951_s17 = scalar_lea.hbm %s5458_s10, %s2482_s14  ;;  %p3223_p9 = pnand %p3222_p0, %p5461_p3 }
  0x8d   : > { %2592 = vmatpush3.bf16.msra.mxu1 %v2836_v7  ;;  %2561 = vmatprep.subr.bf16.mxu0 %v2837_v8  ;;  %5272 = vst [vmem:[#allocation25_spill] sm:$0xff] %v3844_v6  ;;  %s5460_s12 = smov %s5459_s29  ;;  %s4958_s26 = scalar_lea.hbm %s5459_s29, %s2482_s14 }
  0x8e   : > { %2593 = vmatprep.subr.bf16.mxu1 %v2838_v9  ;;  %p3224_p13 = pneg %p3223_p9 }
  0x90   : > { %2562 = vmatpush3.bf16.msra.mxu0 %v2837_v8 }
  0x91   : > { %2594 = vmatpush3.bf16.msra.mxu1 %v2838_v9  ;;  %2563 = vmatprep.subr.bf16.mxu0 %v2839_v10 }
  0x92   : > { %2595 = vmatprep.subr.bf16.mxu1 %v2840_v12 }
  0x94   : > { %2564 = vmatpush3.bf16.msra.mxu0 %v2839_v10  ;;  %v3853_v10 = vsel %vm1576_vm1, 1.0, %v3438_v5 }
  0x95   : > { %2596 = vmatpush3.bf16.msra.mxu1 %v2840_v12  ;;  %2565 = vmatprep.subr.bf16.mxu0 %v2841_v13  ;;  %5273 = vst [vmem:[#allocation26_spill] sm:$0xff] %v3853_v10 }
  0x96   : > { %2597 = vmatprep.subr.bf16.mxu1 %v2842_v14 }
  0x98   : > { %2566 = vmatpush3.bf16.msra.mxu0 %v2841_v13 }
  0x99   : > { %2598 = vmatpush3.bf16.msra.mxu1 %v2842_v14  ;;  %2567 = vmatprep.subr.bf16.mxu0 %v2843_v15  ;;  %v1561_v14 = vadd.s32 %v3799_v43, %v1544_v1 }
  0x9a   : > { %2599 = vmatprep.subr.bf16.mxu1 %v2844_v16 }
  0x9b   : > { %vm1582_vm4 = vcmp.eq.s32.totalorder %v1561_v14, %v3814_v53 }
  0x9c   : > { %2568 = vmatpush3.bf16.msra.mxu0 %v2843_v15  ;;  %v1545_v15 = vadd.s32 56, %v3794_v41  ;;  %v3912_v49 = vsel %vm1582_vm4, 1.0, %v3438_v5 }
  0x9d   : > { %2600 = vmatpush3.bf16.msra.mxu1 %v2844_v16  ;;  %2617 = vmatprep.subr.bf16.mxu0 %v2847_v17  ;;  %v1542_v16 = vadd.s32 32, %v3794_v41  ;;  %5276 = vst [vmem:[#allocation29_spill] sm:$0xff] %v3912_v49  ;;  %v1949_v14 = vsub.f32 1.0, %v3912_v49 }
  0x9e   : > { %2649 = vmatprep.subr.bf16.mxu1 %v2848_v18 }
  0x9f   : > { %2570 = vmatmul.mubr.bf16.vlgmr.msra.gmra.mrb[0].mxu0 %v3760_v19 }
  0xa0   : > { %2602 = vmatmul.mubr.bf16.vlgmr.msra.gmra.mrb[0].mxu1 %v3760_v19  ;;  %2618 = vmatpush3.bf16.msra.mxu0 %v2847_v17 }
  0xa1   : > { %2650 = vmatpush3.bf16.msra.mxu1 %v2848_v18  ;;  %2619 = vmatprep.subr.bf16.mxu0 %v2849_v20 }
  0xa2   : > { %2651 = vmatprep.subr.bf16.mxu1 %v2850_v21  ;;  %2573 = vmatprep.mubr.bf16.mxu0 %v3765_v22 }
  0xa3   : > { %2605 = vmatprep.mubr.bf16.mxu1 %v3765_v22 }
  0xa4   : > { %2620 = vmatpush3.bf16.msra.mxu0 %v2849_v20  ;;  %v1543_v20 = vadd.s32 40, %v3794_v41 }
  0xa5   : > { %2652 = vmatpush3.bf16.msra.mxu1 %v2850_v21  ;;  %2621 = vmatprep.subr.bf16.mxu0 %v2853_v23 }
  0xa6   : > { %2653 = vmatprep.subr.bf16.mxu1 %v2854_v24 }
  0xa7   : > { %2574 = vmatmul.mubr.bf16.gmra.mrb[4].mxu0 %v2852_v25 }
  0xa8   : > { %2606 = vmatmul.mubr.bf16.gmra.mrb[4].mxu1 %v2852_v25  ;;  %2622 = vmatpush3.bf16.msra.mxu0 %v2853_v23  ;;  %v3876_v23 = vsel %vm1579_vm2, 1.0, %v3438_v5 }
  0xa9   : > { %2654 = vmatpush3.bf16.msra.mxu1 %v2854_v24  ;;  %2623 = vmatprep.subr.bf16.mxu0 %v2855_v26  ;;  %5274 = vst [vmem:[#allocation27_spill] sm:$0xff] %v3876_v23  ;;  %v1548_v24 = vadd.s32 80, %v3794_v41 }
  0xaa   : > { %2655 = vmatprep.subr.bf16.mxu1 %v2856_v27  ;;  %2577 = vmatprep.mubr.bf16.mxu0 %v2857_v28 }
  0xab   : > { %2609 = vmatprep.mubr.bf16.mxu1 %v2857_v28 }
  0xac   : > { %2624 = vmatpush3.bf16.msra.mxu0 %v2855_v26  ;;  %v1546_v26 = vadd.s32 64, %v3794_v41 }
  0xad   : > { %2656 = vmatpush3.bf16.msra.mxu1 %v2856_v27  ;;  %2625 = vmatprep.subr.bf16.mxu0 %v2859_v29  ;;  %v1562_v27 = vadd.s32 %v3799_v43, %v1545_v15 }
  0xae   : > { %2657 = vmatprep.subr.bf16.mxu1 %v2860_v30  ;;  %v1563_v54 = vadd.s32 %v3799_v43, %v1546_v26 }
  0xaf   : > { %2578 = vmatmul.mubr.bf16.gmra.mrb[8].mxu0 %v2858_v31  ;;  %vm1583_vm5 = vcmp.eq.s32.totalorder %v1562_v27, %v3814_v53 }
  0xb0   : > { %2610 = vmatmul.mubr.bf16.gmra.mrb[8].mxu1 %v2858_v31  ;;  %2626 = vmatpush3.bf16.msra.mxu0 %v2859_v29  ;;  %v1549_v29 = vadd.s32 88, %v3794_v41  ;;  %vm1584_vm9 = vcmp.eq.s32.totalorder %v1563_v54, %v3814_v53 }
  0xb1   : > { %2658 = vmatpush3.bf16.msra.mxu1 %v2860_v30  ;;  %2627 = vmatprep.subr.bf16.mxu0 %v2861_v32 }
  0xb2   : > { %2659 = vmatprep.subr.bf16.mxu1 %v2862_v33  ;;  %2581 = vmatprep.mubr.bf16.mxu0 %v2863_v34  ;;  %v1566_v1 = vadd.s32 %v3799_v43, %v1549_v29  ;;  %v1568_v29 = vadd.s32 %v3799_v43, %v1551_v55 }
  0xb3   : > { %2613 = vmatprep.mubr.bf16.mxu1 %v2863_v34 }
  0xb4   : > { %2628 = vmatpush3.bf16.msra.mxu0 %v2861_v32  ;;  %v1946_v32 = vsub.f32 1.0, %v3876_v23  ;;  %vm1587_vm10 = vcmp.eq.s32.totalorder %v1566_v1, %v3814_v53  ;;  %vm1589_vm13 = vcmp.eq.s32.totalorder %v1568_v29, %v3814_v53  ;;  %v4019_v1 = vmul.f32 -1e+12, %v1949_v14 }
  0xb5   : > { %2660 = vmatpush3.bf16.msra.mxu1 %v2862_v33  ;;  %2629 = vmatprep.subr.bf16.mxu0 %v2865_v35  ;;  %v1560_v33 = vadd.s32 %v3799_v43, %v1543_v20  ;;  %v3971_v20 = vsel %vm1584_vm9, 1.0, %v3438_v5  ;;  %v3985_v17 = vsel %vm1587_vm10, 1.0, %v3438_v5  ;;  %v4016_v50 = vsel %vm1589_vm13, 1.0, %v3438_v5 }
  0xb6   : > { %2661 = vmatprep.subr.bf16.mxu1 %v2866_v36  ;;  %v3937_v26 = vmul.f32 -1e+12, %v1946_v32  ;;  %5281 = vst [vmem:[#allocation34_spill] sm:$0xff] %v3971_v20  ;;  %5282 = vst [vmem:[#allocation35_spill] sm:$0xff] %v3985_v17 }
  0xb7   : > { %2582 = vmatmul.mubr.bf16.gmra.mrb[12].mxu0 %v2864_v37  ;;  %vm1581_vm7 = vcmp.eq.s32.totalorder %v1560_v33, %v3814_v53  ;;  %5285 = vst [vmem:[#allocation38_spill] sm:$0xff] %v4016_v50  ;;  %5286 = vst [vmem:[#allocation39_spill] sm:$0xff] %v4019_v1 }
  0xb8   : > { %2614 = vmatmul.mubr.bf16.gmra.mrb[12].mxu1 %v2864_v37  ;;  %2630 = vmatpush3.bf16.msra.mxu0 %v2865_v35  ;;  %v3958_v32 = vsel %vm1581_vm7, 1.0, %v3438_v5 }
  0xb9   : > { %2662 = vmatpush3.bf16.msra.mxu1 %v2866_v36  ;;  %2631 = vmatprep.subr.bf16.mxu0 %v2867_v38  ;;  %5279 = vst [vmem:[#allocation32_spill] sm:$0xff] %v3958_v32  ;;  %v1948_v59 = vsub.f32 1.0, %v3958_v32 }
  0xba   : > { %2663 = vmatprep.subr.bf16.mxu1 %v2868_v39  ;;  %2633 = vmatprep.mubr.bf16.mxu0 %v3748_v11 }
  0xbb   : > { %2665 = vmatprep.mubr.bf16.mxu1 %v3748_v11  ;;  %v1951_v11 = vsub.f32 1.0, %v3971_v20 }
  0xbc   : > { %2632 = vmatpush3.bf16.msra.mxu0 %v2867_v38 }
  0xbd   : > { %2664 = vmatpush3.bf16.msra.mxu1 %v2868_v39  ;;  %v1565_v39 = vadd.s32 %v3799_v43, %v1548_v24  ;;  %v1553_v24 = vadd.s32 120, %v3794_v41 }
  0xbf   : > { %2634 = vmatmul.mubr.bf16.vlgmr.msra.gmra.mrb[16].mxu0 %v3760_v19  ;;  %vm1586_vm8 = vcmp.eq.s32.totalorder %v1565_v39, %v3814_v53  ;;  %v3950_v39 = vsel %vm1583_vm5, 1.0, %v3438_v5  ;;  %v1570_v33 = vadd.s32 %v3799_v43, %v1553_v24 }
  0xc0   : > { %2666 = vmatmul.mubr.bf16.vlgmr.msra.gmra.mrb[16].mxu1 %v3760_v19  ;;  %2637 = vmatprep.mubr.bf16.mxu0 %v3765_v22  ;;  %v1945_v19 = vsub.f32 1.0, %v3844_v6  ;;  %5278 = vst [vmem:[#allocation31_spill] sm:$0xff] %v3950_v39 }
  0xc1   : > { %2669 = vmatprep.mubr.bf16.mxu1 %v3765_v22  ;;  %v1943_v22 = vsub.f32 1.0, %v3853_v10  ;;  %vm1591_vm15 = vcmp.eq.s32.totalorder %v1570_v33, %v3814_v53 }
  0xc2   : > { %v4038_v14 = vsel %vm1591_vm15, 1.0, %v3438_v5 }
  0xc3   : > { %5293 = vst [vmem:[#allocation46_spill] sm:$0xff] %v4038_v14 }
  0xc7   : > { %2638 = vmatmul.mubr.bf16.gmra.mrb[20].mxu0 %v2852_v25 }
  0xc8   : > { %2670 = vmatmul.mubr.bf16.gmra.mrb[20].mxu1 %v2852_v25  ;;  %2641 = vmatprep.mubr.bf16.mxu0 %v2857_v28  ;;  %v3880_v25 = vsel %vm1577_vm3, 1.0, %v3438_v5 }
  0xc9   : > { %2673 = vmatprep.mubr.bf16.mxu1 %v2857_v28  ;;  %5275 = vst [vmem:[#allocation28_spill] sm:$0xff] %v3880_v25  ;;  %v1559_v28 = vadd.s32 %v3799_v43, %v1542_v16  ;;  %v1944_v38 = vsub.f32 1.0, %v3880_v25 }
  0xcb   : > { %vm1580_vm6 = vcmp.eq.s32.totalorder %v1559_v28, %v3814_v53 }
  0xcc   : > { %v3940_v28 = vsel %vm1580_vm6, 1.0, %v3438_v5 }
  0xcd   : > { %5277 = vst [vmem:[#allocation30_spill] sm:$0xff] %v3940_v28  ;;  %v1947_v55 = vsub.f32 1.0, %v3940_v28  ;;  %v4026_v28 = vmul.f32 -1e+12, %v1948_v59 }
  0xcf   : > { %2642 = vmatmul.mubr.bf16.gmra.mrb[24].mxu0 %v2858_v31  ;;  %v4021_v20 = vmul.f32 -1e+12, %v1947_v55  ;;  %5289 = vst [vmem:[#allocation42_spill] sm:$0xff] %v4026_v28 }
  0xd0   : > { %2674 = vmatmul.mubr.bf16.gmra.mrb[24].mxu1 %v2858_v31  ;;  %2645 = vmatprep.mubr.bf16.mxu0 %v2863_v34  ;;  %v3889_v31 = vmul.f32 -1e+12, %v1945_v19  ;;  %v1552_v19 = vadd.s32 112, %v3794_v41 }
  0xd1   : > { %2677 = vmatprep.mubr.bf16.mxu1 %v2863_v34  ;;  %v1547_v34 = vadd.s32 72, %v3794_v41  ;;  %5287 = vst [vmem:[#allocation40_spill] sm:$0xff] %v4021_v20 }
  0xd3   : > { %v1564_v16 = vadd.s32 %v3799_v43, %v1547_v34  ;;  %v3944_v34 = vmul.f32 -1e+12, %v1944_v38  ;;  %v1569_v38 = vadd.s32 %v3799_v43, %v1552_v19  ;;  %v1950_v19 = vsub.f32 1.0, %v3950_v39 }
  0xd5   : > { %vm1585_vm11 = vcmp.eq.s32.totalorder %v1564_v16, %v3814_v53  ;;  %vm1590_vm14 = vcmp.eq.s32.totalorder %v1569_v38, %v3814_v53  ;;  %v1954_v16 = vsub.f32 1.0, %v3985_v17 }
  0xd6   : > { %v3999_v62 = vsel %vm1585_vm11, 1.0, %v3438_v5  ;;  %v4030_v56 = vsel %vm1590_vm14, 1.0, %v3438_v5 }
  0xd7   : > { %2646 = vmatmul.mubr.bf16.gmra.mrb[28].mxu0 %v2864_v37  ;;  %5283 = vst [vmem:[#allocation36_spill] sm:$0xff] %v3999_v62  ;;  %5290 = vst [vmem:[#allocation43_spill] sm:$0xff] %v4030_v56 }
  0xd8   : > { %2678 = vmatmul.mubr.bf16.gmra.mrb[28].mxu1 %v2864_v37  ;;  %v3898_v37 = vmul.f32 -1e+12, %v1943_v22  ;;  %v1567_v22 = vadd.s32 %v3799_v43, %v1550_v40  ;;  %v3961_v40 = vsel %vm1586_vm8, 1.0, %v3438_v5 }
  0xd9   : > { %5280 = vst [vmem:[#allocation33_spill] sm:$0xff] %v3961_v40  ;;  %v1953_v7 = vsub.f32 1.0, %v3961_v40  ;;  %v4024_v40 = vmul.f32 -1e+12, %v1950_v19 }
  0xda   : > { %vm1588_vm12 = vcmp.eq.s32.totalorder %v1567_v22, %v3814_v53  ;;  %v1952_v22 = vsub.f32 1.0, %v3999_v62  ;;  %v1956_v53 = vsub.f32 1.0, %v4016_v50  ;;  %v4050_v62 = vmul.f32 -1e+12, %v1954_v16 }
  0xdb   : > { %v4009_v60 = vsel %vm1588_vm12, 1.0, %v3438_v5  ;;  %5288 = vst [vmem:[#allocation41_spill] sm:$0xff] %v4024_v40  ;;  %v4034_v32 = vmul.f32 -1e+12, %v1953_v7  ;;  %v4052_v7 = vmul.f32 -1e+12, %v1951_v11 }
  0xdc   : > { %5284 = vst [vmem:[#allocation37_spill] sm:$0xff] %v4009_v60  ;;  %v1955_v38 = vsub.f32 1.0, %v4009_v60  ;;  %5297 = vst [vmem:[#allocation49_spill] sm:$0xff] %v4050_v62  ;;  %v4064_v25 = vmul.f32 -1e+12, %v1952_v22 }
  0xdd   : > { %5292 = vst [vmem:[#allocation45_spill] sm:$0xff] %v4034_v32  ;;  %5298 = vst [vmem:[#allocation50_spill] sm:$0xff] %v4052_v7 }
  0xde   : > { %5302 = vst [vmem:[#allocation53_spill] sm:$0xff] %v4064_v25  ;;  %v4086_v25 = vmul.f32 -1e+12, %v1956_v53 }
  0xe0   : > { %5308 = vst [vmem:[#allocation57_spill] sm:$0xff] %v4086_v25 }
 0x172   : > { %v3801_v46 = vpop.f32.mrb[0].mxu0 }
 0x173   : > { %v3803_v47 = vpop.f32.mrb[0].mxu1  ;;  %v3805_v48 = vpop.f32.mrb[1].mxu0 }
 0x174   : > { %v3810_v51 = vpop.f32.mrb[1].mxu1  ;;  %v3812_v52 = vpop.f32.mrb[2].mxu0  ;;  %v5294_v59 = vmax.f32 %v3801_v46, %v3803_v47 }
 0x175   : > { %v3820_v57 = vpop.f32.mrb[2].mxu1  ;;  %v3822_v58 = vpop.f32.mrb[3].mxu0  ;;  %v5299_v5 = vmax.f32 %v3805_v48, %v3810_v51 }
 0x176   : > { %v3828_v61 = vpop.f32.mrb[3].mxu1  ;;  %v5304_v23 = vmax.f32 %v3812_v52, %v3820_v57 }
 0x17a   : > { %v3837_v2 = vpop.f32.mrb[4].mxu0 }
 0x17b   : > { %v3839_v3 = vpop.f32.mrb[4].mxu1  ;;  %v3841_v4 = vpop.f32.mrb[5].mxu0 }
 0x17c   : > { %v3848_v8 = vpop.f32.mrb[5].mxu1  ;;  %v3850_v9 = vpop.f32.mrb[6].mxu0 }
 0x17d   : > { %v3859_v12 = vpop.f32.mrb[6].mxu1  ;;  %v3861_v13 = vpop.f32.mrb[7].mxu0 }
 0x17e   : > { %v3868_v18 = vpop.f32.mrb[7].mxu1 }
 0x182   : > { %v3887_v30 = vpop.f32.mrb[8].mxu0 }
 0x183   : > { %v3894_v35 = vpop.f32.mrb[8].mxu1  ;;  %v3896_v36 = vpop.f32.mrb[9].mxu0 }
 0x184   : > { %v3905_v44 = vpop.f32.mrb[9].mxu1  ;;  %v3907_v45 = vpop.f32.mrb[10].mxu0 }
 0x185   : > { %v3918_v63 = vpop.f32.mrb[10].mxu1  ;;  %v3920_v0 = vpop.f32.mrb[11].mxu0 }
 0x186   : > { %v3927_v15 = vpop.f32.mrb[11].mxu1 }
 0x18a   : > { %v3953_v41 = vpop.f32.mrb[12].mxu0 }
 0x18b   : > { %v3965_v54 = vpop.f32.mrb[12].mxu1  ;;  %v3967_v27 = vpop.f32.mrb[13].mxu0 }
 0x18c   : > { %v3977_v42 = vpop.f32.mrb[13].mxu1  ;;  %v3979_v21 = vpop.f32.mrb[14].mxu0 }
 0x18d   : > { %v3990_v43 = vpop.f32.mrb[14].mxu1  ;;  %v3992_v24 = vpop.f32.mrb[15].mxu0 }
 0x18e   : > { %v4003_v29 = vpop.f32.mrb[15].mxu1 }
 0x192   : > { %v4032_v17 = vpop.f32.mrb[16].mxu0 }
 0x193   : > { %5291 = vst [vmem:[#allocation44_spill] sm:$0xff] %v4032_v17  ;;  %v2667_v55 = vpop.f32.mrb[16].mxu1  ;;  %v1186_v33 = vmax.f32 %v5294_v59, %v4032_v17  ;;  %v4044_v19 = vpop.f32.mrb[17].mxu0  ;;  %v4048_v60 = vadd.f32 %v4032_v17, %v3889_v31 }
 0x194   : > { %5295 = vst [vmem:[#allocation47_spill] sm:$0xff] %v4044_v19  ;;  %v1040_v50 = vpop.f32.mrb[17].mxu1  ;;  %v1184_v39 = vmax.f32 %v5299_v5, %v4044_v19  ;;  %v4058_v49 = vpop.f32.mrb[18].mxu0  ;;  %v4062_v59 = vadd.f32 %v3898_v37, %v4044_v19  ;;  %v4075_v5 = vmul.f32 -1e+12, %v1955_v38 }
 0x195   : > { %5296 = vst [vmem:[#allocation48_spill] sm:$0xff] %v4048_v60  ;;  %5300 = vst [vmem:[#allocation51_spill] sm:$0xff] %v4058_v49  ;;  %v4067_v16 = vmax.f32 %v1186_v33, %v2667_v55  ;;  %v2668_v11 = vpop.f32.mrb[18].mxu1  ;;  %v1187_v10 = vmax.f32 %v5304_v23, %v4058_v49  ;;  %v4073_v6 = vpop.f32.mrb[19].mxu0  ;;  %v5307_v33 = vmax.f32 %v3822_v58, %v3828_v61 }
 0x196   : > { %5301 = vst [vmem:[#allocation52_spill] sm:$0xff] %v4062_v59  ;;  %5305 = vst [vmem:[#allocation55_spill] sm:$0xff] %v4075_v5  ;;  %v4078_v37 = vmax.f32 %v1184_v39, %v1040_v50  ;;  %v1043_v22 = vpop.f32.mrb[19].mxu1  ;;  %v4208_v60 = vadd.f32 %v4058_v49, %v3937_v26 }
 0x197   : > { %5303 = vst [vmem:[#allocation54_spill] sm:$0xff] %v4067_v16  ;;  %v1185_v31 = vmax.f32 %v5307_v33, %v4073_v6  ;;  %v1234_v23 = vsub.f32 %v3801_v46, %v4067_v16  ;;  %v1282_v38 = vsub.f32 %v3803_v47, %v4067_v16  ;;  %v1346_v39 = vsub.f32 %v4032_v17, %v4067_v16 }
 0x198   : > { %5306 = vst [vmem:[#allocation56_spill] sm:$0xff] %v4078_v37  ;;  %v1410_v7 = vsub.f32 %v2667_v55, %v4067_v16  ;;  %v1232_v14 = vsub.f32 %v3805_v48, %v4078_v37  ;;  %v1280_v33 = vsub.f32 %v3810_v51, %v4078_v37  ;;  %v1344_v53 = vsub.f32 %v4044_v19, %v4078_v37 }
 0x199   : > { %v1408_v56 = vsub.f32 %v1040_v50, %v4078_v37  ;;  %v1252_v46 = vmul.f32 1.442695, %v1234_v23  ;;  %v1300_v25 = vmul.f32 1.442695, %v1282_v38  ;;  %v1364_v5 = vmul.f32 1.442695, %v1346_v39 }
 0x19a   : > { %v4102_v47 = vmax.f32 %v1187_v10, %v2668_v11  ;;  %v1428_v62 = vmul.f32 1.442695, %v1410_v7  ;;  %v1248_v32 = vmul.f32 1.442695, %v1232_v14  ;;  %v1296_v28 = vmul.f32 1.442695, %v1280_v33 }
 0x19b   : > { %v4104_v55 = vmax.f32 %v1185_v31, %v1043_v22  ;;  %2869 = vpow2.f32 %v1252_v46  ;;  %v1360_v48 = vmul.f32 1.442695, %v1344_v53  ;;  %v1424_v16 = vmul.f32 1.442695, %v1408_v56  ;;  %v4108_v20 = vpop.f32.mrb[20].mxu0  ;;  %v4110_v40 = vpop.f32.mrb[20].mxu1 }
 0x19c   : > { %5309 = vst [vmem:[#allocation58_spill] sm:$0xff] %v4102_v47  ;;  %v1235_v51 = vsub.f32 %v3812_v52, %v4102_v47  ;;  %5311 = vst [vmem:[#allocation60_spill] sm:$0xff] %v4108_v20  ;;  %2871 = vpow2.f32 %v1300_v25  ;;  %v1283_v50 = vsub.f32 %v3820_v57, %v4102_v47  ;;  %v1347_v10 = vsub.f32 %v4058_v49, %v4102_v47  ;;  %v4117_v7 = vpop.f32.mrb[21].mxu0  ;;  %v4119_v31 = vpop.f32.mrb[21].mxu1 }
 0x19d   : > { %5310 = vst [vmem:[#allocation59_spill] sm:$0xff] %v4104_v55  ;;  %v1411_v14 = vsub.f32 %v2668_v11, %v4102_v47  ;;  %5312 = vst [vmem:[#allocation61_spill] sm:$0xff] %v4117_v7  ;;  %2873 = vpow2.f32 %v1364_v5  ;;  %v1233_v52 = vsub.f32 %v3822_v58, %v4104_v55  ;;  %v1281_v25 = vsub.f32 %v3828_v61, %v4104_v55  ;;  %v4125_v23 = vpop.f32.mrb[22].mxu0  ;;  %v4127_v57 = vpop.f32.mrb[22].mxu1 }
 0x19e   : > { %v1254_v56 = vmul.f32 1.442695, %v1235_v51  ;;  %5313 = vst [vmem:[#allocation62_spill] sm:$0xff] %v4125_v23  ;;  %2875 = vpow2.f32 %v1428_v62  ;;  %v1302_v38 = vmul.f32 1.442695, %v1283_v50  ;;  %v1345_v5 = vsub.f32 %v4073_v6, %v4104_v55  ;;  %v4131_v46 = vpop.f32.mrb[23].mxu0 }
 0x19f   : > { %v1366_v39 = vmul.f32 1.442695, %v1347_v10  ;;  %v1430_v11 = vmul.f32 1.442695, %v1411_v14  ;;  %2877 = vpow2.f32 %v1248_v32  ;;  %v1250_v33 = vmul.f32 1.442695, %v1233_v52 }
 0x1a0   : > { %v1298_v53 = vmul.f32 1.442695, %v1281_v25  ;;  %v4133_v58 = vpop.f32.mrb[23].mxu1  ;;  %2879 = vpow2.f32 %v1296_v28  ;;  %v1409_v61 = vsub.f32 %v1043_v22, %v4104_v55  ;;  %v1851_v51 = vmax.f32 %v4032_v17, %v4108_v20  ;;  %5322 = vst [vmem:[#allocation67_spill] sm:$0xff] %v4208_v60 }
 0x1a1   : > { %v1849_v62 = vmax.f32 %v4044_v19, %v4117_v7  ;;  %2881 = vpow2.f32 %v1360_v48  ;;  %v1362_v32 = vmul.f32 1.442695, %v1345_v5  ;;  %v5314_v50 = vmax.f32 %v3837_v2, %v3839_v3 }
 0x1a2   : > { %v1852_v14 = vmax.f32 %v4058_v49, %v4125_v23  ;;  %2883 = vpow2.f32 %v1424_v16  ;;  %v1426_v28 = vmul.f32 1.442695, %v1409_v61  ;;  %v5315_v22 = vmax.f32 %v3841_v4, %v3848_v8  ;;  %v4152_v48 = vpop.f32.mrb[24].mxu0 }
 0x1a3   : > { %v1190_v10 = vmax.f32 %v5314_v50, %v4108_v20  ;;  %5316 = vst [vmem:[#allocation63_spill] sm:$0xff] %v4152_v48  ;;  %2885 = vpow2.f32 %v1254_v56  ;;  %v5318_v50 = vmax.f32 %v3850_v9, %v3859_v12  ;;  %v5319_v61 = vmax.f32 %v3861_v13, %v3868_v18  ;;  %v4167_v47 = vpop.f32.mrb[24].mxu1 }
 0x1a4   : > { %v1188_v52 = vmax.f32 %v5315_v22, %v4117_v7  ;;  %v4165_v22 = vpop.f32.mrb[25].mxu0  ;;  %2887 = vpow2.f32 %v1302_v38  ;;  %v4180_v37 = vpop.f32.mrb[25].mxu1 }
 0x1a5   : > { %v4155_v5 = vmax.f32 %v1190_v10, %v4110_v40  ;;  %v1191_v16 = vmax.f32 %v5318_v50, %v4125_v23  ;;  %v1189_v55 = vmax.f32 %v5319_v61, %v4131_v46  ;;  %v4173_v10 = vmax.f32 %v1851_v51, %v4152_v48  ;;  %v4178_v50 = vpop.f32.mrb[26].mxu0  ;;  %v4182_v17 = vpop.eup %2869 }
 0x1a6   : > { %v4170_v56 = vmax.f32 %v1188_v52, %v4119_v31  ;;  %v4176_v25 = vmax.f32 %v1849_v62, %v4165_v22  ;;  %2889 = vpow2.f32 %v1366_v39  ;;  %v4190_v52 = vpop.f32.mrb[27].mxu0  ;;  %v4192_v62 = vpop.f32.mrb[26].mxu1 }
 0x1a7   : > { %5317 = vst [vmem:[#allocation64_spill] sm:$0xff] %v4155_v5  ;;  %v1238_v61 = vsub.f32 %v3837_v2, %v4155_v5  ;;  %v1286_v38 = vsub.f32 %v3839_v3, %v4155_v5  ;;  %v1350_v51 = vsub.f32 %v4108_v20, %v4155_v5  ;;  %v4194_v19 = vpop.eup %2871  ;;  %2891 = vpow2.f32 %v1430_v11  ;;  %v4202_v3 = vpop.f32.mrb[27].mxu1 }
 0x1a8   : > { %5320 = vst [vmem:[#allocation65_spill] sm:$0xff] %v4170_v56  ;;  %5321 = vst [vmem:[#allocation66_spill] sm:$0xff] %v4194_v19  ;;  %v1414_v1 = vsub.f32 %v4110_v40, %v4155_v5  ;;  %v1236_v39 = vsub.f32 %v3841_v4, %v4170_v56  ;;  %v1284_v2 = vsub.f32 %v3848_v8, %v4170_v56  ;;  %v4204_v59 = vpop.eup %2873  ;;  %2893 = vpow2.f32 %v1250_v33 }
 0x1a9   : > { %v1260_v20 = vmul.f32 1.442695, %v1238_v61  ;;  %v4212_v11 = vadd.f32 %v3944_v34, %v4073_v6  ;;  %v4214_v40 = vpop.eup %2875  ;;  %2895 = vpow2.f32 %v1298_v53  ;;  %v1308_v4 = vmul.f32 1.442695, %v1286_v38 }
 0x1aa   : > { %5324 = vst [vmem:[#allocation69_spill] sm:$0xff] %v4214_v40  ;;  %v1372_v5 = vmul.f32 1.442695, %v1350_v51  ;;  %v1436_v8 = vmul.f32 1.442695, %v1414_v1  ;;  %v4216_v19 = vpop.eup %2877  ;;  %2897 = vpow2.f32 %v1362_v32  ;;  %v1348_v33 = vsub.f32 %v4117_v7, %v4170_v56  ;;  %v4237_v51 = vpop.f32.mrb[28].mxu0 }
 0x1ab   : > { %5323 = vst [vmem:[#allocation68_spill] sm:$0xff] %v4212_v11  ;;  %v1412_v26 = vsub.f32 %v4119_v31, %v4170_v56  ;;  %v4223_v61 = vmax.f32 %v1191_v16, %v4127_v57  ;;  %v4225_v34 = vpop.eup %2879  ;;  %2899 = vpow2.f32 %v1426_v28  ;;  %v4228_v53 = vmax.f32 %v1189_v55, %v4133_v58  ;;  %v4243_v55 = vpop.f32.mrb[29].mxu0 }
 0x1ac   : > { %v5327_v1 = vmax.f32 %v3887_v30, %v3894_v35  ;;  %v4235_v38 = vmax.f32 %v1852_v14, %v4178_v50  ;;  %v4239_v31 = vpop.eup %2881  ;;  %2901 = vpow2.f32 %v1260_v20  ;;  %v1256_v16 = vmul.f32 1.442695, %v1236_v39  ;;  %v4245_v60 = vpop.f32.mrb[28].mxu1 }
 0x1ad   : > { %5325 = vst [vmem:[#allocation70_spill] sm:$0xff] %v4223_v61  ;;  %5326 = vst [vmem:[#allocation71_spill] sm:$0xff] %v4228_v53  ;;  %v1304_v56 = vmul.f32 1.442695, %v1284_v2  ;;  %v1239_v28 = vsub.f32 %v3850_v9, %v4223_v61  ;;  %v4247_v7 = vpop.eup %2883  ;;  %2903 = vpow2.f32 %v1308_v4  ;;  %v1287_v14 = vsub.f32 %v3859_v12, %v4223_v61  ;;  %v4255_v39 = vpop.f32.mrb[30].mxu0 }
 0x1ae   : > { %v1194_v32 = vmax.f32 %v5327_v1, %v4152_v48  ;;  %5328 = vst [vmem:[#allocation72_spill] sm:$0xff] %v4239_v31  ;;  %5329 = vst [vmem:[#allocation73_spill] sm:$0xff] %v4247_v7  ;;  %v1351_v1 = vsub.f32 %v4125_v23, %v4223_v61  ;;  %v1415_v20 = vsub.f32 %v4127_v57, %v4223_v61  ;;  %v4257_v2 = vpop.f32.mrb[29].mxu1  ;;  %v4259_v9 = vpop.eup %2885  ;;  %2905 = vpow2.f32 %v1372_v5 }
 0x1af   : > { %5330 = vst [vmem:[#allocation74_spill] sm:$0xff] %v4255_v39  ;;  %5331 = vst [vmem:[#allocation75_spill] sm:$0xff] %v4259_v9  ;;  %v1368_v49 = vmul.f32 1.442695, %v1348_v33  ;;  %v1237_v4 = vsub.f32 %v3861_v13, %v4228_v53  ;;  %v1285_v12 = vsub.f32 %v3868_v18, %v4228_v53  ;;  %v4265_v7 = vpop.f32.mrb[31].mxu0  ;;  %v4267_v23 = vpop.f32.mrb[30].mxu1  ;;  %2907 = vpow2.f32 %v1436_v8 }
 0x1b0   : > { %5332 = vst [vmem:[#allocation76_spill] sm:$0xff] %v4265_v7  ;;  %v4269_v11 = vpop.eup %2887  ;;  %v1432_v57 = vmul.f32 1.442695, %v1412_v26  ;;  %v1262_v61 = vmul.f32 1.442695, %v1239_v28  ;;  %2909 = vpow2.f32 %v1256_v16  ;;  %v1349_v13 = vsub.f32 %v4131_v46, %v4228_v53  ;;  %v4275_v9 = vpop.f32.mrb[31].mxu1 }
 0x1b1   : > { %5333 = vst [vmem:[#allocation77_spill] sm:$0xff] %v4269_v11  ;;  %v1310_v31 = vmul.f32 1.442695, %v1287_v14  ;;  %v4271_v40 = vpop.eup %2889  ;;  %v1374_v5 = vmul.f32 1.442695, %v1351_v1  ;;  %2911 = vpow2.f32 %v1304_v56  ;;  %v1413_v11 = vsub.f32 %v4133_v58, %v4228_v53 }
 0x1b2   : > { %5334 = vst [vmem:[#allocation78_spill] sm:$0xff] %v4271_v40  ;;  %v1438_v33 = vmul.f32 1.442695, %v1415_v20  ;;  %v4277_v18 = vpop.eup %2891  ;;  %v4282_v8 = vmax.f32 %v1194_v32, %v4167_v47  ;;  %v5337_v26 = vmax.f32 %v3896_v36, %v3905_v44  ;;  %2913 = vpow2.f32 %v1368_v49 }
 0x1b3   : > { %5335 = vst [vmem:[#allocation79_spill] sm:$0xff] %v4277_v18  ;;  %v4288_v28 = vpop.eup %2893  ;;  %v1258_v14 = vmul.f32 1.442695, %v1237_v4  ;;  %v5338_v1 = vmax.f32 %v3907_v45, %v3918_v63  ;;  %v5339_v58 = vmax.f32 %v3920_v0, %v3927_v15  ;;  %2915 = vpow2.f32 %v1432_v57 }
 0x1b4   : > { %5336 = vst [vmem:[#allocation80_spill] sm:$0xff] %v4282_v8  ;;  %v1192_v16 = vmax.f32 %v5337_v26, %v4165_v22  ;;  %v4298_v20 = vpop.eup %2895  ;;  %v1306_v53 = vmul.f32 1.442695, %v1285_v12  ;;  %v1242_v26 = vsub.f32 %v3887_v30, %v4282_v8  ;;  %v1290_v49 = vsub.f32 %v3894_v35, %v4282_v8 }
 0x1b5   : > { %v1195_v56 = vmax.f32 %v5338_v1, %v4178_v50  ;;  %v1193_v32 = vmax.f32 %v5339_v58, %v4190_v52  ;;  %v4304_v4 = vpop.eup %2897  ;;  %2917 = vpow2.f32 %v1262_v61  ;;  %v1354_v1 = vsub.f32 %v4152_v48, %v4282_v8 }
 0x1b6   : > { %5340 = vst [vmem:[#allocation81_spill] sm:$0xff] %v4304_v4  ;;  %v1418_v18 = vsub.f32 %v4167_v47, %v4282_v8  ;;  %v4311_v58 = vmax.f32 %v1192_v16, %v4180_v37  ;;  %v4313_v57 = vpop.eup %2899  ;;  %2919 = vpow2.f32 %v1310_v31  ;;  %v1370_v12 = vmul.f32 1.442695, %v1349_v13 }
 0x1b7   : > { %v1434_v30 = vmul.f32 1.442695, %v1413_v11  ;;  %v4316_v40 = vmax.f32 %v1195_v56, %v4192_v62  ;;  %v4318_v35 = vpop.eup %2901  ;;  %2921 = vpow2.f32 %v1374_v5  ;;  %v1268_v61 = vmul.f32 1.442695, %v1242_v26 }
 0x1b8   : > { %5341 = vst [vmem:[#allocation82_spill] sm:$0xff] %v4311_v58  ;;  %v1316_v4 = vmul.f32 1.442695, %v1290_v49  ;;  %v1240_v48 = vsub.f32 %v3896_v36, %v4311_v58  ;;  %v4322_v47 = vpop.eup %2903  ;;  %2923 = vpow2.f32 %v1438_v33  ;;  %v1288_v16 = vsub.f32 %v3905_v44, %v4311_v58 }
 0x1b9   : > { %5342 = vst [vmem:[#allocation83_spill] sm:$0xff] %v4316_v40  ;;  %v1352_v11 = vsub.f32 %v4165_v22, %v4311_v58  ;;  %v1416_v31 = vsub.f32 %v4180_v37, %v4311_v58  ;;  %v4330_v13 = vpop.eup %2905  ;;  %2925 = vpow2.f32 %v1258_v14  ;;  %v1380_v5 = vmul.f32 1.442695, %v1354_v1 }
 0x1ba   : > { %v1243_v56 = vsub.f32 %v3907_v45, %v4316_v40  ;;  %v1291_v36 = vsub.f32 %v3918_v63, %v4316_v40  ;;  %v4336_v33 = vpop.eup %2907  ;;  %2927 = vpow2.f32 %v1306_v53  ;;  %v1444_v44 = vmul.f32 1.442695, %v1418_v18 }
 0x1bb   : > { %v1264_v26 = vmul.f32 1.442695, %v1240_v48  ;;  %v1312_v49 = vmul.f32 1.442695, %v1288_v16  ;;  %v4338_v8 = vpop.eup %2909  ;;  %2929 = vpow2.f32 %v1370_v12  ;;  %v1376_v37 = vmul.f32 1.442695, %v1352_v11 }
 0x1bc   : > { %v1440_v58 = vmul.f32 1.442695, %v1416_v31  ;;  %v1355_v14 = vsub.f32 %v4178_v50, %v4316_v40  ;;  %v4342_v1 = vpop.eup %2911  ;;  %2931 = vpow2.f32 %v1434_v30  ;;  %v1419_v45 = vsub.f32 %v4192_v62, %v4316_v40 }
 0x1bd   : > { %v4347_v63 = vmax.f32 %v1193_v32, %v4202_v3  ;;  %v1859_v48 = vmax.f32 %v4173_v10, %v4237_v51  ;;  %v4351_v53 = vpop.eup %2913  ;;  %2933 = vpow2.f32 %v1268_v61  ;;  %v1270_v18 = vmul.f32 1.442695, %v1243_v56 }
 0x1be   : > { %5344 = vst [vmem:[#allocation85_spill] sm:$0xff] %v4351_v53  ;;  %v5345_v30 = vmax.f32 %v3953_v41, %v3965_v54  ;;  %v4359_v11 = vpop.eup %2915  ;;  %2935 = vpow2.f32 %v1316_v4  ;;  %v1318_v62 = vmul.f32 1.442695, %v1291_v36  ;;  %v1382_v36 = vmul.f32 1.442695, %v1355_v14 }
 0x1bf   : > { %5343 = vst [vmem:[#allocation84_spill] sm:$0xff] %v4347_v63  ;;  %5346 = vst [vmem:[#allocation86_spill] sm:$0xff] %v4359_v11  ;;  %v1241_v32 = vsub.f32 %v3920_v0, %v4347_v63  ;;  %v1289_v10 = vsub.f32 %v3927_v15, %v4347_v63  ;;  %v4365_v61 = vpop.eup %2917  ;;  %2937 = vpow2.f32 %v1380_v5  ;;  %v1353_v31 = vsub.f32 %v4190_v52, %v4347_v63 }
 0x1c0   : > { %v1198_v16 = vmax.f32 %v5345_v30, %v4237_v51  ;;  %v1417_v56 = vsub.f32 %v4202_v3, %v4347_v63  ;;  %v4374_v4 = vpop.eup %2919  ;;  %2939 = vpow2.f32 %v1444_v44  ;;  %v1446_v0 = vmul.f32 1.442695, %v1419_v45 }
 0x1c1   : > { %v1860_v15 = vmax.f32 %v4235_v38, %v4255_v39  ;;  %v4378_v12 = vpop.eup %2921  ;;  %2941 = vpow2.f32 %v1264_v26  ;;  %v1266_v5 = vmul.f32 1.442695, %v1241_v32  ;;  %v1314_v40 = vmul.f32 1.442695, %v1289_v10 }
 0x1c2   : > { %v4372_v30 = vmax.f32 %v1198_v16, %v4245_v60  ;;  %v4382_v3 = vpop.eup %2923  ;;  %2943 = vpow2.f32 %v1312_v49  ;;  %v1378_v26 = vmul.f32 1.442695, %v1353_v31  ;;  %v5351_v31 = vmax.f32 %v3979_v21, %v3990_v43 }
 0x1c3   : > { %v4390_v14 = vpop.eup %2925  ;;  %2945 = vpow2.f32 %v1376_v37  ;;  %v1862_v45 = vmax.f32 %v1859_v48, %v1860_v15  ;;  %v5350_v37 = vmax.f32 %v4073_v6, %v4131_v46 }
 0x1c4   : > { %5347 = vst [vmem:[#allocation87_spill] sm:$0xff] %v4372_v30  ;;  %v1246_v11 = vsub.f32 %v3953_v41, %v4372_v30  ;;  %v1294_v16 = vsub.f32 %v3965_v54, %v4372_v30  ;;  %v1358_v44 = vsub.f32 %v4237_v51, %v4372_v30  ;;  %v1422_v38 = vsub.f32 %v4245_v60, %v4372_v30  ;;  %v4396_v49 = vpop.eup %2927 }
 0x1c5   : > { %v5348_v41 = vmax.f32 %v3967_v27, %v3977_v42  ;;  %2947 = vpow2.f32 %v1440_v58  ;;  %v1442_v54 = vmul.f32 1.442695, %v1417_v56  ;;  %v4398_v53 = vpop.eup %2929  ;;  %v1854_v48 = vmax.f32 %v5350_v37, %v4190_v52  ;;  %v5354_v56 = vld [vmem:[#allocation66_spill] sm:$0xff] }
 0x1c6   : > { %v1276_v10 = vmul.f32 1.442695, %v1246_v11  ;;  %v1324_v63 = vmul.f32 1.442695, %v1294_v16  ;;  %2949 = vpow2.f32 %v1270_v18  ;;  %v1199_v15 = vmax.f32 %v5351_v31, %v4255_v39  ;;  %v4411_v58 = vpop.eup %2931 }
 0x1c7   : > { %v1196_v32 = vmax.f32 %v5348_v41, %v4243_v55  ;;  %5352 = vst [vmem:[#allocation89_spill] sm:$0xff] %v4411_v58  ;;  %2951 = vpow2.f32 %v1318_v62  ;;  %v5353_v18 = vmax.f32 %v3992_v24, %v4003_v29  ;;  %v1330_v16 = vadd.f32 %v5354_v56, %v4182_v17 }
 0x1c8   : > { %v1328_v41 = vadd.f32 %v4225_v34, %v4216_v19  ;;  %2953 = vpow2.f32 %v1382_v36  ;;  %v1858_v19 = vmax.f32 %v1854_v48, %v4265_v7  ;;  %v4435_v34 = vmax.f32 %v1199_v15, %v4267_v23 }
 0x1c9   : > { %v4401_v60 = vmax.f32 %v1196_v32, %v4257_v2  ;;  %v1197_v11 = vmax.f32 %v5353_v18, %v4265_v7  ;;  %v4421_v32 = vpop.eup %2933  ;;  %2955 = vpow2.f32 %v1446_v0  ;;  %v1452_v18 = vmul.f32 1.442695, %v1422_v38 }
 0x1ca   : > { %v4429_v30 = vpop.eup %2935  ;;  %5356 = vst [vmem:[#allocation90_spill] sm:$0xff] %v4435_v34  ;;  %2957 = vpow2.f32 %v1266_v5  ;;  %v5357_v0 = vmax.f32 %v4176_v25, %v4243_v55  ;;  %v1295_v5 = vsub.f32 %v3990_v43, %v4435_v34 }
 0x1cb   : > { %5349 = vst [vmem:[#allocation88_spill] sm:$0xff] %v4401_v60  ;;  %v1244_v37 = vsub.f32 %v3967_v27, %v4401_v60  ;;  %v1292_v62 = vsub.f32 %v3977_v42, %v4401_v60  ;;  %v1356_v31 = vsub.f32 %v4243_v55, %v4401_v60  ;;  %5355 = vst [vmem:[#allocation66_spill] sm:$0xff] %v4429_v30  ;;  %v4437_v36 = vpop.eup %2937  ;;  %v1388_v27 = vmul.f32 1.442695, %v1358_v44 }
 0x1cc   : > { %v1420_v17 = vsub.f32 %v4257_v2, %v4401_v60  ;;  %v4439_v56 = vpop.eup %2939  ;;  %2959 = vpow2.f32 %v1314_v40  ;;  %v1861_v30 = vmax.f32 %v5357_v0, %v1858_v19  ;;  %v1247_v2 = vsub.f32 %v3979_v21, %v4435_v34 }
 0x1cd   : > { %v1272_v42 = vmul.f32 1.442695, %v1244_v37  ;;  %v1320_v58 = vmul.f32 1.442695, %v1292_v62  ;;  %v4446_v48 = vpop.eup %2941  ;;  %2961 = vpow2.f32 %v1378_v26  ;;  %v1359_v44 = vsub.f32 %v4255_v39, %v4435_v34 }
 0x1ce   : > { %v1423_v40 = vsub.f32 %v4267_v23, %v4435_v34  ;;  %v4454_v38 = vpop.eup %2943  ;;  %2963 = vpow2.f32 %v1442_v54  ;;  %v1384_v25 = vmul.f32 1.442695, %v1356_v31  ;;  %v1863_v15 = vmax.f32 %v1861_v30, %v1862_v45 }
 0x1cf   : > { %v4457_v37 = vmax.f32 %v1197_v11, %v4275_v9  ;;  %v4459_v21 = vpop.eup %2945  ;;  %2965 = vpow2.f32 %v1276_v10  ;;  %v1448_v26 = vmul.f32 1.442695, %v1420_v17  ;;  %v1278_v62 = vmul.f32 1.442695, %v1247_v2 }
 0x1d0   : > { %v1326_v43 = vmul.f32 1.442695, %v1295_v5  ;;  %v4461_v19 = vpop.eup %2947  ;;  %2967 = vpow2.f32 %v1324_v63  ;;  %v1864_v0 = vrot.slane %v1863_v15, 4  ;;  %v1394_v11 = vadd.f32 %v4204_v59, %v1330_v16  ;;  %v5361_v59 = vld [vmem:[#allocation72_spill] sm:$0xff] }
 0x1d1   : > { %5358 = vst [vmem:[#allocation91_spill] sm:$0xff] %v4457_v37  ;;  %v1245_v23 = vsub.f32 %v3992_v24, %v4457_v37  ;;  %v1293_v54 = vsub.f32 %v4003_v29, %v4457_v37  ;;  %v4467_v30 = vpop.eup %2949  ;;  %2969 = vpow2.f32 %v1388_v27  ;;  %v1357_v45 = vsub.f32 %v4265_v7, %v4457_v37  ;;  %v5359_v27 = vld [vmem:[#allocation69_spill] sm:$0xff] }
 0x1d2   : > { %v1421_v10 = vsub.f32 %v4275_v9, %v4457_v37  ;;  %v4474_v31 = vpop.eup %2951  ;;  %2971 = vpow2.f32 %v1452_v18  ;;  %v1865_v63 = vmax.f32 %v1863_v15, %v1864_v0  ;;  %v1390_v17 = vmul.f32 1.442695, %v1359_v44  ;;  %v5362_v18 = vld [vmem:[#allocation75_spill] sm:$0xff]  ;;  %v5363_v15 = vld [vmem:[#allocation77_spill] sm:$0xff]  ;;  %v5364_v0 = vld [vmem:[#allocation48_spill] sm:$0xff] }
 0x1d3   : > { %v1454_v24 = vmul.f32 1.442695, %v1423_v40  ;;  %v4476_v2 = vpop.eup %2953  ;;  %2973 = vpow2.f32 %v1272_v42  ;;  %v1274_v29 = vmul.f32 1.442695, %v1245_v23  ;;  %v4478_v5 = vmul.f32 1.442695, %v1293_v54 }
 0x1d4   : > { %v4481_v34 = vadd.f32 %v5359_v27, %v1394_v11  ;;  %v4483_v60 = vpop.eup %2955  ;;  %v1866_v9 = vrot.slane %v1865_v63, 2  ;;  %v4485_v37 = vmul.f32 1.442695, %v1357_v45  ;;  %v1392_v16 = vadd.f32 %v5361_v59, %v1328_v41  ;;  %v5365_v23 = vld [vmem:[#allocation52_spill] sm:$0xff]  ;;  %v5368_v59 = vld [vmem:[#allocation73_spill] sm:$0xff] }
 0x1d5   : > { %v1331_v44 = vadd.f32 %v5363_v15, %v5362_v18  ;;  %v4490_v40 = vpop.eup %2957  ;;  %2975 = vpow2.f32 %v1320_v58  ;;  %v1329_v42 = vadd.f32 %v4298_v20, %v4288_v28  ;;  %v5366_v54 = vmax.f32 %v5364_v0, %v5365_v23  ;;  %v5367_v11 = vld [vmem:[#allocation68_spill] sm:$0xff]  ;;  %v5370_v58 = vld [vmem:[#allocation78_spill] sm:$0xff]  ;;  %v5371_v28 = vld [vmem:[#allocation81_spill] sm:$0xff] }
 0x1d6   : > { %5360 = vst [vmem:[#allocation69_spill] sm:$0xff] %v4481_v34  ;;  %v1334_v45 = vadd.f32 %v4322_v47, %v4318_v35  ;;  %v4502_v39 = vpop.eup %2959  ;;  %2977 = vpow2.f32 %v1384_v25  ;;  %v1867_v41 = vmax.f32 %v1865_v63, %v1866_v9  ;;  %v4505_v18 = vadd.f32 %v5368_v59, %v1392_v16  ;;  %v5372_v0 = vld [vmem:[#allocation39_spill] sm:$0xff] }
 0x1d7   : > { %v4498_v27 = vmax.f32 %v5367_v11, %v5366_v54  ;;  %v1395_v15 = vadd.f32 %v5370_v58, %v1331_v44  ;;  %v4508_v34 = vpop.eup %2961  ;;  %2979 = vpow2.f32 %v1448_v26  ;;  %v1393_v20 = vadd.f32 %v5371_v28, %v1329_v42  ;;  %v5373_v11 = vld [vmem:[#allocation60_spill] sm:$0xff]  ;;  %v5374_v25 = vld [vmem:[#allocation79_spill] sm:$0xff] }
 0x1d8   : > { %5369 = vst [vmem:[#allocation72_spill] sm:$0xff] %v4505_v18  ;;  %v1398_v54 = vadd.f32 %v4330_v13, %v1334_v45  ;;  %v4514_v23 = vadd.f32 %v5373_v11, %v5372_v0  ;;  %v4516_v35 = vpop.eup %2963  ;;  %v1868_v47 = vrot.slane %v1867_v41, 1  ;;  %2981 = vpow2.f32 %v1278_v62 }
 0x1d9   : > { %v4519_v63 = vadd.f32 %v5374_v25, %v1395_v15  ;;  %v1335_v9 = vadd.f32 %v4374_v4, %v4365_v61  ;;  %v4523_v16 = vpop.eup %2965  ;;  %2983 = vpow2.f32 %v1326_v43  ;;  %v4526_v26 = vadd.f32 %v4313_v57, %v1393_v20  ;;  %v5382_v57 = vld [vmem:[#allocation41_spill] sm:$0xff]  ;;  %v5383_v43 = vld [vmem:[#allocation62_spill] sm:$0xff]  ;;  %v5388_v15 = vld [vmem:[#allocation51_spill] sm:$0xff] }
 0x1da   : > { %5376 = vst [vmem:[#allocation77_spill] sm:$0xff] %v4523_v16  ;;  %v4529_v13 = vadd.f32 %v4336_v33, %v1398_v54  ;;  %v4533_v42 = vpop.eup %2967  ;;  %v4535_v62 = vmax.f32 %v1867_v41, %v1868_v47  ;;  %2985 = vpow2.f32 %v1390_v17  ;;  %v4537_v0 = vmul.f32 1.442695, %v1421_v10  ;;  %v5386_v10 = vld [vmem:[#allocation47_spill] sm:$0xff] }
 0x1db   : > { %5375 = vst [vmem:[#allocation75_spill] sm:$0xff] %v4519_v63  ;;  %5377 = vst [vmem:[#allocation73_spill] sm:$0xff] %v4526_v26  ;;  %v1399_v61 = vadd.f32 %v4378_v12, %v1335_v9  ;;  %v4540_v4 = vpop.eup %2969  ;;  %2987 = vpow2.f32 %v1454_v24  ;;  %v4544_v45 = vadd.f32 %v5383_v43, %v5382_v57  ;;  %v1332_v33 = vadd.f32 %v4342_v1, %v4338_v8  ;;  %v5387_v24 = vld [vmem:[#allocation44_spill] sm:$0xff]  ;;  %v5389_v8 = vld [vmem:[#allocation61_spill] sm:$0xff] }
 0x1dc   : > { %5378 = vst [vmem:[#allocation78_spill] sm:$0xff] %v4529_v13  ;;  %5379 = vst [vmem:[#allocation81_spill] sm:$0xff] %v4533_v42  ;;  %v1333_v59 = vadd.f32 %v4396_v49, %v4390_v14  ;;  %v4550_v41 = vpop.eup %2971  ;;  %v1870_v17 = vsub.f32 %v5386_v10, %v4535_v62  ;;  %v1871_v12 = vsub.f32 %v4073_v6, %v4535_v62  ;;  %2989 = vpow2.f32 %v1274_v29  ;;  %v5390_v49 = vld [vmem:[#allocation40_spill] sm:$0xff]  ;;  %v5391_v29 = vld [vmem:[#allocation63_spill] sm:$0xff] }
 0x1dd   : > { %5380 = vst [vmem:[#allocation39_spill] sm:$0xff] %v4537_v0  ;;  %5381 = vst [vmem:[#allocation60_spill] sm:$0xff] %v4540_v4  ;;  %v1872_v58 = vsub.f32 %v5387_v24, %v4535_v62  ;;  %v1873_v28 = vsub.f32 %v5388_v15, %v4535_v62  ;;  %v4560_v20 = vpop.eup %2973  ;;  %v1874_v1 = vsub.f32 %v5389_v8, %v4535_v62  ;;  %2991 = vpow2.f32 %v4478_v5 }
 0x1de   : > { %5384 = vst [vmem:[#allocation79_spill] sm:$0xff] %v4544_v45  ;;  %5385 = vst [vmem:[#allocation41_spill] sm:$0xff] %v4550_v41  ;;  %v1875_v14 = vsub.f32 %v4131_v46, %v4535_v62  ;;  %v4568_v54 = vadd.f32 %v5390_v49, %v5389_v8  ;;  %v1876_v6 = vsub.f32 %v5373_v11, %v4535_v62  ;;  %v1886_v15 = vmul.f32 1.442695, %v1870_v17 }
 0x1df   : > { %v1877_v47 = vsub.f32 %v5383_v43, %v4535_v62  ;;  %v1878_v25 = vsub.f32 %v4165_v22, %v4535_v62  ;;  %v1879_v9 = vsub.f32 %v4190_v52, %v4535_v62  ;;  %v4578_v57 = vpop.eup %2975  ;;  %v1880_v10 = vsub.f32 %v5391_v29, %v4535_v62 }
 0x1e0   : > { %v1881_v24 = vsub.f32 %v4178_v50, %v4535_v62  ;;  %v1882_v11 = vsub.f32 %v4243_v55, %v4535_v62  ;;  %v4586_v8 = vpop.eup %2977  ;;  %v1888_v43 = vmul.f32 1.442695, %v1871_v12  ;;  %v1890_v49 = vmul.f32 1.442695, %v1872_v58 }
 0x1e1   : > { %v1892_v44 = vmul.f32 1.442695, %v1873_v28  ;;  %v4589_v13 = vpop.eup %2979  ;;  %v1883_v41 = vsub.f32 %v4265_v7, %v4535_v62  ;;  %v1884_v26 = vsub.f32 %v4237_v51, %v4535_v62  ;;  %2993 = vpow2.f32 %v1886_v15 }
 0x1e2   : > { %v1894_v63 = vmul.f32 1.442695, %v1874_v1  ;;  %v4595_v4 = vpop.eup %2981  ;;  %2995 = vpow2.f32 %v1888_v43  ;;  %v1896_v17 = vmul.f32 1.442695, %v1875_v14  ;;  %v1898_v18 = vmul.f32 1.442695, %v1876_v6 }
 0x1e3   : > { %v1900_v12 = vmul.f32 1.442695, %v1877_v47  ;;  %v4597_v58 = vpop.eup %2983  ;;  %2997 = vpow2.f32 %v1890_v49  ;;  %v1902_v5 = vmul.f32 1.442695, %v1878_v25  ;;  %v1904_v28 = vmul.f32 1.442695, %v1879_v9 }
 0x1e4   : > { %v1906_v42 = vmul.f32 1.442695, %v1880_v10  ;;  %v4599_v16 = vpop.eup %2985  ;;  %2999 = vpow2.f32 %v1892_v44  ;;  %v1908_v7 = vmul.f32 1.442695, %v1881_v24  ;;  %v1910_v0 = vmul.f32 1.442695, %v1882_v11 }
 0x1e5   : > { %v4602_v15 = vadd.f32 %v4382_v3, %v1399_v61  ;;  %v4604_v1 = vpop.eup %2987  ;;  %3001 = vpow2.f32 %v1894_v63  ;;  %v5392_v14 = vld [vmem:[#allocation67_spill] sm:$0xff]  ;;  %v5393_v47 = vld [vmem:[#allocation85_spill] sm:$0xff]  ;;  %v1397_v25 = vadd.f32 %v4398_v53, %v1333_v59  ;;  %v1912_v9 = vmul.f32 1.442695, %v1883_v41  ;;  %v5394_v44 = vld [vmem:[#allocation66_spill] sm:$0xff] }
 0x1e6   : > { %v1994_v6 = vmax.f32 %v5392_v14, %v4544_v45  ;;  %v1396_v43 = vadd.f32 %v5393_v47, %v1332_v33  ;;  %3003 = vpow2.f32 %v1896_v17  ;;  %v1914_v10 = vmul.f32 1.442695, %v1884_v26  ;;  %v2990_v11 = vpop.eup %2989  ;;  %v5396_v63 = vld [vmem:[#allocation86_spill] sm:$0xff]  ;;  %v5397_v45 = vld [vmem:[#allocation89_spill] sm:$0xff] }
 0x1e7   : > { %v1338_v24 = vadd.f32 %v5394_v44, %v4421_v32  ;;  %3005 = vpow2.f32 %v1898_v18  ;;  %v5395_v3 = vmax.f32 %v4514_v23, %v4498_v27  ;;  %v4619_v14 = vadd.f32 %v5397_v45, %v1397_v25  ;;  %v5398_v53 = vld [vmem:[#allocation42_spill] sm:$0xff]  ;;  %v5399_v18 = vld [vmem:[#allocation45_spill] sm:$0xff]  ;;  %v2992_v41 = vpop.eup %2991 }
 0x1e8   : > { %v4616_v49 = vadd.f32 %v5396_v63, %v1396_v43  ;;  %3007 = vpow2.f32 %v1900_v12  ;;  %v4623_v33 = vadd.f32 %v5398_v53, %v4131_v46  ;;  %v1339_v32 = vadd.f32 %v4474_v31, %v4467_v30  ;;  %v5400_v12 = vld [vmem:[#allocation49_spill] sm:$0xff]  ;;  %v5410_v53 = vld [vmem:[#allocation43_spill] sm:$0xff] }
 0x1e9   : > { %v1997_v61 = vmax.f32 %v1994_v6, %v5395_v3  ;;  %v1402_v26 = vadd.f32 %v4437_v36, %v1338_v24  ;;  %3009 = vpow2.f32 %v1902_v5  ;;  %v4631_v59 = vadd.f32 %v5391_v29, %v5399_v18  ;;  %v5405_v24 = vld [vmem:[#allocation77_spill] sm:$0xff] }
 0x1ea   : > { %v1336_v45 = vadd.f32 %v4454_v38, %v4446_v48  ;;  %3011 = vpow2.f32 %v1904_v28  ;;  %v1403_v36 = vadd.f32 %v4476_v2, %v1339_v32  ;;  %v1337_v30 = vadd.f32 %v4502_v39, %v4490_v40  ;;  %v5409_v63 = vld [vmem:[#allocation57_spill] sm:$0xff] }
 0x1eb   : > { %v1998_v27 = vmax.f32 %v4568_v54, %v1997_v61  ;;  %v4636_v46 = vadd.f32 %v4439_v56, %v1402_v26  ;;  %v2994_v31 = vpop.eup %2993  ;;  %3013 = vpow2.f32 %v1906_v42  ;;  %v4644_v29 = vadd.f32 %v4178_v50, %v5400_v12  ;;  %v5407_v61 = vld [vmem:[#allocation69_spill] sm:$0xff] }
 0x1ec   : > { %v1400_v48 = vadd.f32 %v4459_v21, %v1336_v45  ;;  %v2996_v38 = vpop.eup %2995  ;;  %3015 = vpow2.f32 %v1908_v7  ;;  %v4648_v56 = vadd.f32 %v4483_v60, %v1403_v36  ;;  %v1401_v2 = vadd.f32 %v4508_v34, %v1337_v30  ;;  %v5401_v7 = vld [vmem:[#allocation50_spill] sm:$0xff]  ;;  %v5412_v45 = vld [vmem:[#allocation72_spill] sm:$0xff] }
 0x1ed   : > { %v1995_v17 = vmax.f32 %v4623_v33, %v1998_v27  ;;  %v1340_v39 = vadd.f32 %v4578_v57, %v4560_v20  ;;  %v2998_v40 = vpop.eup %2997  ;;  %3017 = vpow2.f32 %v1910_v0  ;;  %v1918_v42 = vadd.f32 %v2996_v38, %v2994_v31  ;;  %v5413_v36 = vld [vmem:[#allocation60_spill] sm:$0xff] }
 0x1ee   : > { %v4655_v50 = vadd.f32 %v4461_v19, %v1400_v48  ;;  %v3000_v28 = vpop.eup %2999  ;;  %3019 = vpow2.f32 %v1912_v9  ;;  %v4659_v21 = vadd.f32 %v5401_v7, %v4165_v22  ;;  %v4662_v60 = vadd.f32 %v4516_v35, %v1401_v2  ;;  %v5402_v19 = vld [vmem:[#allocation53_spill] sm:$0xff]  ;;  %v5403_v35 = vld [vmem:[#allocation55_spill] sm:$0xff]  ;;  %v5415_v48 = vld [vmem:[#allocation46_spill] sm:$0xff] }
 0x1ef   : > { %v1996_v5 = vmax.f32 %v4631_v59, %v1995_v17  ;;  %v1404_v34 = vadd.f32 %v4586_v8, %v1340_v39  ;;  %v3002_v20 = vpop.eup %3001  ;;  %3021 = vpow2.f32 %v1914_v10  ;;  %v1919_v0 = vadd.f32 %v2998_v40, %v1918_v42  ;;  %v5404_v10 = vld [vmem:[#allocation39_spill] sm:$0xff]  ;;  %v5418_v42 = vld [vmem:[#allocation41_spill] sm:$0xff]  ;;  %v5419_v7 = vld [vmem:[#allocation78_spill] sm:$0xff] }
 0x1f0   : > { %v1341_v6 = vadd.f32 %v2992_v41, %v2990_v11  ;;  %v3004_v47 = vpop.eup %3003  ;;  %3023 = vpow2.f32 %v4485_v37  ;;  %v4669_v43 = vadd.f32 %v5402_v19, %v4190_v52  ;;  %v4676_v25 = vadd.f32 %v5403_v35, %v4243_v55  ;;  %v5406_v11 = vld [vmem:[#allocation81_spill] sm:$0xff]  ;;  %v5408_v52 = vld [vmem:[#allocation76_spill] sm:$0xff]  ;;  %v5414_v17 = vld [vmem:[#allocation75_spill] sm:$0xff] }
 0x1f1   : > { %v1999_v57 = vmax.f32 %v4644_v29, %v1996_v5  ;;  %v4672_v22 = vadd.f32 %v4589_v13, %v1404_v34  ;;  %v3006_v8 = vpop.eup %3005  ;;  %v1920_v9 = vadd.f32 %v3000_v28, %v1919_v0  ;;  %3025 = vpow2.f32 %v5404_v10 }
 0x1f2   : > { %v1342_v37 = vadd.f32 %v5406_v11, %v5405_v24  ;;  %v3008_v3 = vpop.eup %3007  ;;  %3027 = vlog2.f32 %v5407_v61  ;;  %v4685_v13 = vadd.f32 %v5409_v63, %v5408_v52  ;;  %v5411_v26 = vsub.f32 1.0, %v5410_v53  ;;  %v5423_v61 = vld [vmem:[#allocation27_spill] sm:$0xff]  ;;  %v5424_v63 = vld [vmem:[#allocation28_spill] sm:$0xff] }
 0x1f3   : > { %v2000_v44 = vmax.f32 %v4659_v21, %v1999_v57  ;;  %v1343_v32 = vadd.f32 %v4597_v58, %v4595_v4  ;;  %v3010_v27 = vpop.eup %3009  ;;  %v1921_v18 = vadd.f32 %v3002_v20, %v1920_v9  ;;  %3029 = vlog2.f32 %v5412_v45  ;;  %v5417_v4 = vld [vmem:[#allocation73_spill] sm:$0xff] }
 0x1f4   : > { %v1973_v55 = vmul.f32 -1e+12, %v5411_v26  ;;  %v1406_v30 = vadd.f32 %v5413_v36, %v1342_v37  ;;  %v3012_v31 = vpop.eup %3011  ;;  %3031 = vlog2.f32 %v5414_v17  ;;  %v5416_v38 = vsub.f32 1.0, %v5415_v48 }
 0x1f5   : > { %v2003_v41 = vmax.f32 %v4669_v43, %v2000_v44  ;;  %v1407_v12 = vadd.f32 %v4599_v16, %v1343_v32  ;;  %v3014_v39 = vpop.eup %3013  ;;  %v1922_v40 = vadd.f32 %v3004_v47, %v1921_v18  ;;  %3033 = vlog2.f32 %v5417_v4  ;;  %v5422_v44 = vld [vmem:[#allocation26_spill] sm:$0xff] }
 0x1f6   : > { %v1974_v2 = vmul.f32 -1e+12, %v5416_v38  ;;  %v1470_v5 = vadd.f32 %v5418_v42, %v1406_v30  ;;  %v3016_v28 = vpop.eup %3015  ;;  %3035 = vlog2.f32 %v5419_v7  ;;  %v4706_v57 = vadd.f32 %v4237_v51, %v1973_v55  ;;  %v5421_v51 = vld [vmem:[#allocation25_spill] sm:$0xff] }
 0x1f7   : > { %v2001_v58 = vmax.f32 %v4676_v25, %v2003_v41  ;;  %v1471_v34 = vadd.f32 %v4604_v1, %v1407_v12  ;;  %v3018_v20 = vpop.eup %3017  ;;  %v1923_v0 = vadd.f32 %v3006_v8, %v1922_v40  ;;  %3037 = vlog2.f32 %v4602_v15  ;;  %v5420_v15 = vld [vmem:[#allocation74_spill] sm:$0xff]  ;;  %v5425_v55 = vld [vmem:[#allocation29_spill] sm:$0xff] }
 0x1f8   : > { %v4708_v47 = vpop.eup %3019  ;;  %3039 = vlog2.f32 %v4616_v49  ;;  %v4719_v8 = vadd.f32 %v5420_v15, %v1974_v2  ;;  %v1626_v10 = vmul.f32 -1e+12, %v5421_v51  ;;  %v1624_v24 = vmul.f32 -1e+12, %v5422_v44  ;;  %v5426_v12 = vld [vmem:[#allocation54_spill] sm:$0xff]  ;;  %v5427_v2 = vld [vmem:[#allocation56_spill] sm:$0xff] }
 0x1f9   : > { %v2002_v16 = vmax.f32 %v4685_v13, %v2001_v58  ;;  %v4714_v19 = vpop.eup %3021  ;;  %v1924_v35 = vadd.f32 %v3008_v3, %v1923_v0  ;;  %3041 = vlog2.f32 %v4619_v14  ;;  %v1627_v52 = vmul.f32 -1e+12, %v5423_v61  ;;  %v5430_v51 = vld [vmem:[#allocation64_spill] sm:$0xff]  ;;  %v5431_v44 = vld [vmem:[#allocation31_spill] sm:$0xff] }
 0x1fa   : > { %v3024_v9 = vpop.eup %3023  ;;  %3043 = vlog2.f32 %v4636_v46  ;;  %v1625_v26 = vmul.f32 -1e+12, %v5424_v63  ;;  %v4730_v32 = vmul.f32 -1e+12, %v5425_v55  ;;  %v1885_v36 = vsub.f32 %v5420_v15, %v4535_v62 }
 0x1fb   : > { %v2004_v1 = vmax.f32 %v4706_v57, %v2002_v16  ;;  %v3026_v11 = vpop.eup %3025  ;;  %v1925_v37 = vadd.f32 %v3010_v27, %v1924_v35  ;;  %3045 = vlog2.f32 %v4648_v56  ;;  %v1405_v49 = vadd.f32 %v3024_v9, %v1341_v6 }
 0x1fc   : > { %v3028_v3 = vpop.eup %3027  ;;  %3047 = vlog2.f32 %v4655_v50  ;;  %v1916_v61 = vmul.f32 1.442695, %v1885_v36 }
 0x1fd   : > { %v2005_v14 = vmax.f32 %v4719_v8, %v2004_v1  ;;  %v3030_v18 = vpop.eup %3029  ;;  %v1926_v46 = vadd.f32 %v3012_v31, %v1925_v37  ;;  %v1477_v45 = vmul.f32 0.6931472, %v3028_v3  ;;  %3049 = vlog2.f32 %v4662_v60 }
 0x1fe   : > { %v1469_v27 = vadd.f32 %v3026_v11, %v1405_v49  ;;  %v3032_v56 = vpop.eup %3031  ;;  %v1473_v6 = vmul.f32 0.6931472, %v3030_v18  ;;  %3051 = vlog2.f32 %v4672_v22  ;;  %v1631_v11 = vmul.f32 -1e+12, %v5431_v44  ;;  %v5433_v18 = vld [vmem:[#allocation65_spill] sm:$0xff]  ;;  %v5442_v44 = vld [vmem:[#allocation88_spill] sm:$0xff] }
 0x1ff   : > { %v2006_v41 = vrot.slane %v2005_v14, 4  ;;  %v3034_v30 = vpop.eup %3033  ;;  %v1927_v17 = vadd.f32 %v3014_v39, %v1926_v46  ;;  %v1506_v38 = vadd.f32 %v1477_v45, %v5426_v12  ;;  %v1479_v50 = vmul.f32 0.6931472, %v3032_v56  ;;  %v5428_v39 = vld [vmem:[#allocation58_spill] sm:$0xff] }
 0x200   : > { %3053 = vlog2.f32 %v1469_v27  ;;  %v3036_v31 = vpop.eup %3035  ;;  %v1504_v40 = vadd.f32 %v1473_v6, %v5427_v2  ;;  %v1475_v60 = vmul.f32 0.6931472, %v3034_v30  ;;  %v5434_v6 = vld [vmem:[#allocation71_spill] sm:$0xff] }
 0x201   : > { %3055 = vlog2.f32 %v1470_v5  ;;  %v2007_v4 = vmax.f32 %v2005_v14, %v2006_v41  ;;  %v3038_v58 = vpop.eup %3037  ;;  %v1928_v42 = vadd.f32 %v3016_v28, %v1927_v17  ;;  %v4739_v22 = vadd.f32 %v1626_v10, %v1506_v38  ;;  %1522 = vst [vmem:[%s4743_s7 + $0x10] sm:$0xff] %v1506_v38  ;;  %v5429_v5 = vld [vmem:[#allocation59_spill] sm:$0xff] }
 0x202   : > { %v1507_v7 = vadd.f32 %v1479_v50, %v5428_v39  ;;  %v1485_v0 = vmul.f32 0.6931472, %v3036_v31  ;;  %v3040_v16 = vpop.eup %3039  ;;  %v4747_v35 = vadd.f32 %v1624_v24, %v1504_v40  ;;  %1520 = vst [vmem:[%s4743_s7] sm:$0xff] %v1504_v40  ;;  %v1505_v1 = vadd.f32 %v1475_v60, %v5429_v5  ;;  %v5432_v24 = vld [vmem:[#allocation70_spill] sm:$0xff]  ;;  %v5436_v2 = vld [vmem:[#allocation83_spill] sm:$0xff] }
 0x203   : > { %v1487_v28 = vmul.f32 0.6931472, %v3038_v58  ;;  %3057 = vlog2.f32 %v1471_v34  ;;  %v3042_v15 = vpop.eup %3041  ;;  %v1929_v9 = vadd.f32 %v3018_v20, %v1928_v42  ;;  %1660 = vmax.xlane.f32.xlu1 %v4739_v22  ;;  %v1481_v37 = vmul.f32 0.6931472, %v3040_v16  ;;  %v5437_v58 = vld [vmem:[#allocation32_spill] sm:$0xff]  ;;  %v5438_v39 = vld [vmem:[#allocation82_spill] sm:$0xff] }
 0x204   : > { %1523 = vst [vmem:[%s4743_s7 + $0x18] sm:$0xff] %v1507_v7  ;;  %v1510_v10 = vadd.f32 %v1485_v0, %v5430_v51  ;;  %v3044_v49 = vpop.eup %3043  ;;  %1656 = vmax.xlane.f32.xlu0 %v4747_v35  ;;  %1521 = vst [vmem:[%s4743_s7 + $0x8] sm:$0xff] %v1505_v1  ;;  %v1483_v3 = vmul.f32 0.6931472, %v3042_v15  ;;  %v2008_v34 = vrot.slane %v2007_v4, 2  ;;  %v4759_v55 = vadd.f32 %v1627_v52, %v1507_v7  ;;  %v5435_v52 = vld [vmem:[#allocation80_spill] sm:$0xff] }
 0x205   : > { %v1511_v14 = vadd.f32 %v1487_v28, %v5432_v24  ;;  %v3046_v20 = vpop.eup %3045  ;;  %v1930_v63 = vadd.f32 %v4708_v47, %v1929_v9  ;;  %v1508_v46 = vadd.f32 %v1481_v37, %v5433_v18  ;;  %v1493_v45 = vmul.f32 0.6931472, %v3044_v49  ;;  %v5439_v5 = vld [vmem:[#allocation30_spill] sm:$0xff]  ;;  %v5441_v51 = vld [vmem:[#allocation35_spill] sm:$0xff]  ;;  %v5443_v24 = vld [vmem:[#allocation33_spill] sm:$0xff] }
 0x206   : > { %1526 = vst [vmem:[%s4743_s7 + $0x30] sm:$0xff] %v1510_v10  ;;  %v3048_v27 = vpop.eup %3047  ;;  %v4763_v56 = vadd.f32 %v1625_v26, %v1505_v1  ;;  %v1509_v41 = vadd.f32 %v1483_v3, %v5434_v6  ;;  %v1495_v30 = vmul.f32 0.6931472, %v3046_v20  ;;  %v2009_v17 = vmax.f32 %v2007_v4, %v2008_v34  ;;  %v5444_v3 = vld [vmem:[#allocation91_spill] sm:$0xff] }
 0x207   : > { %1527 = vst [vmem:[%s4743_s7 + $0x38] sm:$0xff] %v1511_v14  ;;  %v3050_v36 = vpop.eup %3049  ;;  %v4768_v12 = vadd.f32 %v4714_v19, %v1930_v63  ;;  %1662 = vmax.xlane.f32.xlu1 %v4759_v55  ;;  %v4771_v47 = vadd.f32 %v1631_v11, %v1511_v14  ;;  %1524 = vst [vmem:[%s4743_s7 + $0x20] sm:$0xff] %v1508_v46  ;;  %v1514_v38 = vadd.f32 %v1493_v45, %v5435_v52  ;;  %v5445_v20 = vld [vmem:[#allocation87_spill] sm:$0xff] }
 0x208   : > { %v1489_v50 = vmul.f32 0.6931472, %v3048_v27  ;;  %v3052_v26 = vpop.eup %3051  ;;  %1658 = vmax.xlane.f32.xlu0 %v4763_v56  ;;  %v4777_v31 = vadd.f32 %v4730_v32, %v1510_v10  ;;  %1525 = vst [vmem:[%s4743_s7 + $0x28] sm:$0xff] %v1509_v41  ;;  %v1515_v40 = vadd.f32 %v1495_v30, %v5436_v2  ;;  %v1491_v19 = vmul.f32 0.6931472, %v3050_v36  ;;  %v5440_v32 = vld [vmem:[#allocation84_spill] sm:$0xff] }
 0x209   : > { %v2010_v60 = vrot.slane %v2009_v17, 1  ;;  %v1629_v42 = vmul.f32 -1e+12, %v5437_v58  ;;  %1530 = vst [vmem:[%s4743_s7 + $0x50] sm:$0xff] %v1514_v38  ;;  %v1497_v0 = vmul.f32 0.6931472, %v3052_v26  ;;  %3059 = vpow2.f32 %v1916_v61 }
 0x20a   : > { %v3054_v4 = vpop.eup %3053  ;;  %v1512_v7 = vadd.f32 %v1489_v50, %v5438_v39  ;;  %v1628_v1 = vmul.f32 -1e+12, %v5439_v5  ;;  %1531 = vst [vmem:[%s4743_s7 + $0x58] sm:$0xff] %v1515_v40  ;;  %v1513_v28 = vadd.f32 %v1491_v19, %v5440_v32  ;;  %v1635_v10 = vmul.f32 -1e+12, %v5441_v51  ;;  %v5446_v27 = vld [vmem:[#allocation52_spill] sm:$0xff] }
 0x20b   : > { %v3056_v16 = vpop.eup %3055  ;;  %v1499_v15 = vmul.f32 0.6931472, %v3054_v4  ;;  %v4787_v9 = vmax.f32 %v2009_v17, %v2010_v60  ;;  %1670 = vmax.xlane.f32.xlu1 %v4771_v47  ;;  %v1516_v11 = vadd.f32 %v1497_v0, %v5442_v44  ;;  %v1634_v14 = vmul.f32 -1e+12, %v5443_v24  ;;  %v5447_v17 = vld [vmem:[#allocation90_spill] sm:$0xff]  ;;  %v5449_v50 = vld [vmem:[#allocation48_spill] sm:$0xff] }
 0x20c   : > { %1528 = vst [vmem:[%s4743_s7 + $0x40] sm:$0xff] %v1512_v7  ;;  %v1501_v37 = vmul.f32 0.6931472, %v3056_v16  ;;  %1668 = vmax.xlane.f32.xlu0 %v4777_v31  ;;  %1529 = vst [vmem:[%s4743_s7 + $0x48] sm:$0xff] %v1513_v28  ;;  %v4797_v61 = vadd.f32 %v1629_v42, %v1509_v41  ;;  %v4801_v45 = vadd.f32 %v1628_v1, %v1508_v46  ;;  %v5448_v41 = vld [vmem:[#allocation68_spill] sm:$0xff]  ;;  %v5451_v60 = vld [vmem:[#allocation67_spill] sm:$0xff] }
 0x20d   : > { %v3058_v49 = vpop.eup %3057  ;;  %v1517_v34 = vadd.f32 %v1499_v15, %v5444_v3  ;;  %1532 = vst [vmem:[%s4743_s7 + $0x60] sm:$0xff] %v1516_v11  ;;  %v2012_v6 = vsub.f32 %v5446_v27, %v4787_v9  ;;  %v4807_v30 = vadd.f32 %v1635_v10, %v1515_v40  ;;  %v2013_v52 = vsub.f32 %v5448_v41, %v4787_v9  ;;  %v5450_v2 = vld [vmem:[#allocation36_spill] sm:$0xff]  ;;  %v5452_v4 = vld [vmem:[#allocation34_spill] sm:$0xff]  ;;  %v5454_v32 = vld [vmem:[#allocation37_spill] sm:$0xff] }
 0x20e   : > { %v1518_v63 = vadd.f32 %v1501_v37, %v5445_v20  ;;  %v1503_v18 = vmul.f32 0.6931472, %v3058_v49  ;;  %v2014_v26 = vsub.f32 %v5449_v50, %v4787_v9  ;;  %v4816_v46 = vadd.f32 %v1634_v14, %v1514_v38  ;;  %v5453_v0 = vld [vmem:[#allocation38_spill] sm:$0xff] }
 0x20f   : > { %1533 = vst [vmem:[%s4743_s7 + $0x68] sm:$0xff] %v1517_v34  ;;  %1666 = vmax.xlane.f32.xlu1 %v4797_v61  ;;  %v1633_v19 = vmul.f32 -1e+12, %v5450_v2  ;;  %v2015_v40 = vsub.f32 %v5451_v60, %v4787_v9  ;;  %v1632_v58 = vmul.f32 -1e+12, %v5452_v4  ;;  %v2016_v5 = vsub.f32 %v4568_v54, %v4787_v9 }
 0x210   : > { %1534 = vst [vmem:[%s4743_s7 + $0x70] sm:$0xff] %v1518_v63  ;;  %v1519_v36 = vadd.f32 %v1503_v18, %v5447_v17  ;;  %1664 = vmax.xlane.f32.xlu0 %v4801_v45  ;;  %v2028_v42 = vmul.f32 1.442695, %v2012_v6  ;;  %v1637_v16 = vmul.f32 -1e+12, %v5453_v0  ;;  %v2017_v44 = vsub.f32 %v4623_v33, %v4787_v9 }
 0x211   : > { %v2030_v1 = vmul.f32 1.442695, %v2013_v52  ;;  %v2032_v38 = vmul.f32 1.442695, %v2014_v26  ;;  %v1636_v15 = vmul.f32 -1e+12, %v5454_v32  ;;  %v4830_v10 = vadd.f32 %v1633_v19, %v1513_v28 }
 0x212   : > { %1535 = vst [vmem:[%s4743_s7 + $0x78] sm:$0xff] %v1519_v36  ;;  %3061 = vpow2.f32 %v2028_v42  ;;  %v2034_v37 = vmul.f32 1.442695, %v2015_v40  ;;  %v4834_v49 = vadd.f32 %v1632_v58, %v1512_v7  ;;  %v4837_v54 = vadd.f32 %v1637_v16, %v1517_v34  ;;  %v5455_v7 = vld [vmem:[#allocation79_spill] sm:$0xff] }
 0x213   : > { %v3060_v39 = vpop.eup %3059  ;;  %1678 = vmax.xlane.f32.xlu1 %v4807_v30  ;;  %3063 = vpow2.f32 %v2030_v1  ;;  %v2018_v14 = vsub.f32 %v4514_v23, %v4787_v9  ;;  %v4842_v28 = vadd.f32 %v1636_v15, %v1516_v11  ;;  %v1639_v33 = vmul.f32 -1e+12, %v5415_v48 }
 0x214   : > { %1676 = vmax.xlane.f32.xlu0 %v4816_v46  ;;  %v1932_v51 = vadd.f32 %v3060_v39, %v4768_v12  ;;  %3065 = vpow2.f32 %v2032_v38  ;;  %v2036_v12 = vmul.f32 1.442695, %v2016_v5  ;;  %v2019_v20 = vsub.f32 %v5455_v7, %v4787_v9 }
 0x215   : > { %3067 = vpow2.f32 %v2034_v37  ;;  %v2038_v18 = vmul.f32 1.442695, %v2017_v44  ;;  %v1638_v34 = vmul.f32 -1e+12, %v5410_v53  ;;  %v2020_v23 = vsub.f32 %v4659_v21, %v4787_v9 }
 0x216   : > { %v1933_v24 = vrot.slane %v1932_v51, 4  ;;  %3069 = vpow2.f32 %v2036_v12  ;;  %v2040_v6 = vmul.f32 1.442695, %v2018_v14  ;;  %v4852_v17 = vadd.f32 %v1639_v33, %v1519_v36 }
 0x217   : > { %1674 = vmax.xlane.f32.xlu1 %v4830_v10  ;;  %v2021_v48 = vsub.f32 %v4669_v43, %v4787_v9  ;;  %3071 = vpow2.f32 %v2038_v18  ;;  %v2042_v41 = vmul.f32 1.442695, %v2019_v20  ;;  %v4856_v53 = vadd.f32 %v1638_v34, %v1518_v63 }
 0x218   : > { %1672 = vmax.xlane.f32.xlu0 %v4834_v49  ;;  %v1934_v3 = vadd.f32 %v1933_v24, %v1932_v51  ;;  %v2022_v21 = vsub.f32 %v4631_v59, %v4787_v9  ;;  %3073 = vpow2.f32 %v2040_v6  ;;  %v2044_v2 = vmul.f32 1.442695, %v2020_v23 }
 0x219   : > { %v2023_v43 = vsub.f32 %v4644_v29, %v4787_v9  ;;  %3075 = vpow2.f32 %v2042_v41  ;;  %v2046_v63 = vmul.f32 1.442695, %v2021_v48  ;;  %v2024_v58 = vsub.f32 %v4676_v25, %v4787_v9 }
 0x21a   : > { %v1935_v27 = vrot.slane %v1934_v3, 2  ;;  %v2048_v59 = vmul.f32 1.442695, %v2022_v21  ;;  %v2025_v0 = vsub.f32 %v4685_v13, %v4787_v9  ;;  %v2026_v29 = vsub.f32 %v4706_v57, %v4787_v9 }
 0x21b   : > { %1682 = vmax.xlane.f32.xlu1 %v4837_v54  ;;  %v2050_v16 = vmul.f32 1.442695, %v2023_v43  ;;  %v2052_v38 = vmul.f32 1.442695, %v2024_v58  ;;  %v2027_v25 = vsub.f32 %v4719_v8, %v4787_v9 }
 0x21c   : > { %1680 = vmax.xlane.f32.xlu0 %v4842_v28  ;;  %v1936_v11 = vadd.f32 %v1935_v27, %v1934_v3  ;;  %v3062_v52 = vpop.eup %3061  ;;  %v2054_v51 = vmul.f32 1.442695, %v2025_v0  ;;  %v2056_v13 = vmul.f32 1.442695, %v2026_v29 }
 0x21d   : > { %v3064_v26 = vpop.eup %3063  ;;  %v2058_v3 = vmul.f32 1.442695, %v2027_v25 }
 0x21e   : > { %v1937_v50 = vrot.slane %v1936_v11, 1  ;;  %v2060_v19 = vadd.f32 %v3064_v26, %v3062_v52  ;;  %v3066_v60 = vpop.eup %3065 }
 0x21f   : > { %1686 = vmax.xlane.f32.xlu1 %v4852_v17  ;;  %v3068_v4 = vpop.eup %3067 }
 0x220   : > { %1684 = vmax.xlane.f32.xlu0 %v4856_v53  ;;  %v1938_v36 = vadd.f32 %v1937_v50, %v1936_v11  ;;  %v2061_v40 = vadd.f32 %v3066_v60, %v2060_v19  ;;  %v3070_v39 = vpop.eup %3069 }
 0x221   : > { %v3072_v1 = vpop.eup %3071 }
 0x222   : > { %3077 = vlog2.f32 %v1938_v36  ;;  %v2062_v42 = vadd.f32 %v3068_v4, %v2061_v40  ;;  %v3074_v15 = vpop.eup %3073 }
 0x223   : > { %3079 = vpow2.f32 %v2044_v2  ;;  %v3076_v37 = vpop.eup %3075 }
 0x224   : > { %3081 = vpow2.f32 %v2046_v63  ;;  %v2063_v5 = vadd.f32 %v3070_v39, %v2062_v42 }
 0x225   : > { %3083 = vpow2.f32 %v2048_v59 }
 0x226   : > { %v2064_v32 = vadd.f32 %v3072_v1, %v2063_v5  ;;  %3085 = vpow2.f32 %v2050_v16 }
 0x227   : > { %3087 = vpow2.f32 %v2052_v38 }
 0x228   : > { %v2065_v44 = vadd.f32 %v3074_v15, %v2064_v32  ;;  %3089 = vpow2.f32 %v2054_v51 }
 0x229   : > { %3091 = vpow2.f32 %v2056_v13 }
 0x22a   : > { %v2066_v14 = vadd.f32 %v3076_v37, %v2065_v44  ;;  %3093 = vpow2.f32 %v2058_v3 }
 0x22c   : > { %v3078_v24 = vpop.eup %3077 }
 0x22d   : > { %v3080_v12 = vpop.eup %3079  ;;  %v1940_v57 = vmul.f32 0.6931472, %v3078_v24 }
 0x22e   : > { %v2067_v33 = vadd.f32 %v3080_v12, %v2066_v14  ;;  %v3082_v7 = vpop.eup %3081 }
 0x22f   : > { %v1941_v20 = vadd.f32 %v1940_v57, %v4535_v62  ;;  %v3084_v18 = vpop.eup %3083 }
 0x230   : > { %v2068_v8 = vadd.f32 %v3082_v7, %v2067_v33  ;;  %v3086_v27 = vpop.eup %3085 }
 0x231   : > { %1942 = vst [vmem:[%s322_s5] sm:$0x1] %v1941_v20  ;;  %v3088_v6 = vpop.eup %3087  ;;  %s3439_s5 = smov [#allocation9]  }
 0x232   : > { %v2069_v34 = vadd.f32 %v3084_v18, %v2068_v8  ;;  %v3090_v48 = vpop.eup %3089  ;;  %s3225_s15 = sshll.u32 %s3439_s5, 4  ;;  %s3226_s15 = int_to_ptr.vmem [resolvable:$false] %s3225_s15 }
 0x233   : > { %v3092_v52 = vpop.eup %3091  ;;  %s3227_s1 = scalar_lea.vmem %s3226_s15, 32  ;;  %p3228_p1 = scmp.lt.s32.totalorder %s4960_s4, %s3226_s15 }
 0x234   : > { %v2070_v23 = vadd.f32 %v3086_v27, %v2069_v34  ;;  %v3094_v26 = vpop.eup %3093  ;;  %p3229_p10 = scmp.lt.s32.totalorder %s3227_s1, %s3221_s3 }
 0x236   : > { %v2071_v11 = vadd.f32 %v3088_v6, %v2070_v23  ;;  %p3230_p11 = por %p3229_p10, %p3228_p1 }
 0x238   : > { %v2072_v41 = vadd.f32 %v3090_v48, %v2071_v11  ;;  %p3231_p2 = pnand %p3230_p11, %p3224_p13 }
 0x23a   : > { %v2073_v50 = vadd.f32 %v3092_v52, %v2072_v41 }
 0x23c   : > { %v2074_v62 = vadd.f32 %v3094_v26, %v2073_v50 }
 0x23e   : > { %v2075_v21 = vrot.slane %v2074_v62, 4 }
 0x240   : > { %v2076_v2 = vadd.f32 %v2075_v21, %v2074_v62 }
 0x242   : > { %v2077_v36 = vrot.slane %v2076_v2, 2 }
 0x244   : > { %v2078_v19 = vadd.f32 %v2077_v36, %v2076_v2 }
 0x246   : > { %v2079_v60 = vrot.slane %v2078_v19, 1 }
 0x248   : > { %v2080_v43 = vadd.f32 %v2079_v60, %v2078_v19 }
 0x24a   : > { %3095 = vlog2.f32 %v2080_v43 }
 0x254   : > { %v3096_v63 = vpop.eup %3095 }
 0x255   : > { %v2082_v40 = vmul.f32 0.6931472, %v3096_v63 }
 0x257   : > { %v2083_v4 = vadd.f32 %v2082_v40, %v4787_v9 }
 0x259   : > { %2084 = vst [vmem:[%s5233_s9] sm:$0x1] %v2083_v4 }
 0x290   : > { %v4880_v58 = vpop.xlane.xlu1 %1660 }
 0x291   : > { %v1690_v59 = vsub.f32 %v4739_v22, %v4880_v58  ;;  %v4884_v42 = vpop.xlane.xlu0 %1656 }
 0x292   : > { %v1688_v39 = vsub.f32 %v4747_v35, %v4884_v42 }
 0x293   : > { %v1708_v0 = vmul.f32 1.442695, %v1690_v59 }
 0x294   : > { %v1704_v16 = vmul.f32 1.442695, %v1688_v39  ;;  %v4888_v5 = vpop.xlane.xlu1 %1662 }
 0x295   : > { %3097 = vpow2.f32 %v1708_v0  ;;  %v1691_v9 = vsub.f32 %v4759_v55, %v4888_v5  ;;  %v4892_v1 = vpop.xlane.xlu0 %1658 }
 0x296   : > { %v1689_v29 = vsub.f32 %v4763_v56, %v4892_v1  ;;  %3099 = vpow2.f32 %v1704_v16 }
 0x297   : > { %v1710_v38 = vmul.f32 1.442695, %v1691_v9 }
 0x298   : > { %v4896_v22 = vpop.xlane.xlu1 %1670  ;;  %v1706_v32 = vmul.f32 1.442695, %v1689_v29 }
 0x299   : > { %3101 = vpow2.f32 %v1710_v38  ;;  %v4898_v35 = vpop.xlane.xlu0 %1668  ;;  %v1695_v15 = vsub.f32 %v4771_v47, %v4896_v22 }
 0x29a   : > { %v1694_v25 = vsub.f32 %v4777_v31, %v4898_v35  ;;  %3103 = vpow2.f32 %v1706_v32 }
 0x29b   : > { %v1718_v44 = vmul.f32 1.442695, %v1695_v15 }
 0x29c   : > { %v1716_v55 = vmul.f32 1.442695, %v1694_v25  ;;  %v4904_v51 = vpop.xlane.xlu1 %1666 }
 0x29d   : > { %v4906_v56 = vpop.xlane.xlu0 %1664  ;;  %v1693_v37 = vsub.f32 %v4797_v61, %v4904_v51 }
 0x29e   : > { %3105 = vpow2.f32 %v1716_v55  ;;  %v1692_v13 = vsub.f32 %v4801_v45, %v4906_v56 }
 0x29f   : > { %v3098_v24 = vpop.eup %3097  ;;  %3107 = vpow2.f32 %v1718_v44  ;;  %v1714_v31 = vmul.f32 1.442695, %v1693_v37 }
 0x2a0   : > { %v1712_v14 = vmul.f32 1.442695, %v1692_v13  ;;  %1740 = vadd.xlane.f32.xlu0 %v3098_v24  ;;  %v4912_v47 = vpop.xlane.xlu1 %1678  ;;  %v3100_v57 = vpop.eup %3099 }
 0x2a1   : > { %v4914_v12 = vpop.xlane.xlu0 %1676  ;;  %v1699_v3 = vsub.f32 %v4807_v30, %v4912_v47 }
 0x2a2   : > { %3109 = vpow2.f32 %v1712_v14  ;;  %v1698_v61 = vsub.f32 %v4816_v46, %v4914_v12 }
 0x2a3   : > { %v3102_v33 = vpop.eup %3101  ;;  %3111 = vpow2.f32 %v1714_v31  ;;  %v1726_v20 = vmul.f32 1.442695, %v1699_v3 }
 0x2a4   : > { %v1724_v7 = vmul.f32 1.442695, %v1698_v61  ;;  %1736 = vadd.xlane.f32.xlu0 %v3100_v57  ;;  %1742 = vadd.xlane.f32.xlu1 %v3102_v33  ;;  %v4920_v45 = vpop.xlane.xlu1 %1674  ;;  %v3104_v34 = vpop.eup %3103 }
 0x2a5   : > { %v4922_v8 = vpop.xlane.xlu0 %1672  ;;  %v1697_v18 = vsub.f32 %v4830_v10, %v4920_v45 }
 0x2a6   : > { %3113 = vpow2.f32 %v1724_v7  ;;  %v1696_v30 = vsub.f32 %v4834_v49, %v4922_v8 }
 0x2a7   : > { %3115 = vpow2.f32 %v1726_v20  ;;  %v1722_v6 = vmul.f32 1.442695, %v1697_v18 }
 0x2a8   : > { %v3106_v27 = vpop.eup %3105  ;;  %v1720_v46 = vmul.f32 1.442695, %v1696_v30  ;;  %1738 = vadd.xlane.f32.xlu1 %v3104_v34  ;;  %v4928_v23 = vpop.xlane.xlu1 %1682 }
 0x2a9   : > { %1748 = vadd.xlane.f32.xlu0 %v3106_v27  ;;  %v4930_v11 = vpop.xlane.xlu0 %1680  ;;  %v1701_v48 = vsub.f32 %v4837_v54, %v4928_v23  ;;  %v3108_v41 = vpop.eup %3107 }
 0x2aa   : > { %3117 = vpow2.f32 %v1720_v46  ;;  %v1700_v10 = vsub.f32 %v4842_v28, %v4930_v11 }
 0x2ab   : > { %v1730_v49 = vmul.f32 1.442695, %v1701_v48  ;;  %3119 = vpow2.f32 %v1722_v6 }
 0x2ac   : > { %v3110_v52 = vpop.eup %3109  ;;  %v1728_v50 = vmul.f32 1.442695, %v1700_v10  ;;  %1750 = vadd.xlane.f32.xlu1 %v3108_v41  ;;  %v4936_v26 = vpop.xlane.xlu1 %1686 }
 0x2ad   : > { %1744 = vadd.xlane.f32.xlu0 %v3110_v52  ;;  %v4938_v62 = vpop.xlane.xlu0 %1684  ;;  %v1703_v21 = vsub.f32 %v4852_v17, %v4936_v26  ;;  %v3112_v2 = vpop.eup %3111 }
 0x2ae   : > { %3121 = vpow2.f32 %v1728_v50  ;;  %v1702_v54 = vsub.f32 %v4856_v53, %v4938_v62 }
 0x2af   : > { %3123 = vpow2.f32 %v1730_v49  ;;  %v1734_v28 = vmul.f32 1.442695, %v1703_v21 }
 0x2b0   : > { %v3114_v36 = vpop.eup %3113  ;;  %v1732_v19 = vmul.f32 1.442695, %v1702_v54  ;;  %1746 = vadd.xlane.f32.xlu1 %v3112_v2 }
 0x2b1   : > { %1756 = vadd.xlane.f32.xlu0 %v3114_v36  ;;  %v3116_v60 = vpop.eup %3115 }
 0x2b2   : > { %3125 = vpow2.f32 %v1732_v19 }
 0x2b3   : > { %3127 = vpow2.f32 %v1734_v28 }
 0x2b4   : > { %v3118_v43 = vpop.eup %3117  ;;  %1758 = vadd.xlane.f32.xlu1 %v3116_v60 }
 0x2b5   : > { %1752 = vadd.xlane.f32.xlu0 %v3118_v43  ;;  %v3120_v17 = vpop.eup %3119 }
 0x2b8   : > { %v3122_v53 = vpop.eup %3121  ;;  %1754 = vadd.xlane.f32.xlu1 %v3120_v17 }
 0x2b9   : > { %v3124_v63 = vpop.eup %3123  ;;  %1760 = vadd.xlane.f32.xlu0 %v3122_v53 }
 0x2bc   : > { %v3126_v40 = vpop.eup %3125  ;;  %1762 = vadd.xlane.f32.xlu1 %v3124_v63 }
 0x2bd   : > { %v3128_v4 = vpop.eup %3127  ;;  %1764 = vadd.xlane.f32.xlu0 %v3126_v40 }
 0x2c0   : > { %1766 = vadd.xlane.f32.xlu1 %v3128_v4 }
 0x2c1   : > { %3234 = shalt.err (!%p3231_p2)
}
 0x2c2   : > { %s3235_s29 = scalar_lea.hbm %s4951_s17, 16  ;;  %s3239_s0 = scalar_lea.hbm %s5458_s10, 64 }
 0x2c3   : > { %p3236_p7 = scmp.ne.s32.totalorder %s4951_s17, %s3235_s29  ;;  %p3240_p8 = scmp.lt.u32.totalorder %s4951_s17, %s5458_s10 }
 0x2c4   : > { %p3241_p6 = scmp.lt.u32.totalorder %s3239_s0, %s3235_s29  ;;  %p3243_p0 = scmp.lt.u32.totalorder %s3235_s29, %s4951_s17 }
 0x2c5   : > { %p3237_p5 = pnand %p3236_p7, %p5461_p3 }
 0x2c6   : > { %p3242_p4 = por %p3241_p6, %p3240_p8 }
 0x2c7   : > { %p3238_p12 = pneg %p3237_p5 }
 0x2c8   : > { %p3244_p9 = por %p3243_p0, %p3242_p4 }
 0x2ca   : > { %p3245_p13 = pnand %p3244_p9, %p3238_p12 }
 0x2cc   : > { %3248 = shalt.err (!%p3245_p13)
}
 0x2cd   : > { %2686 = dma.vmem_to_hbm [thread:$0]  (%p5461_p3), %s4960_s4, 16, %s4951_s17, %s4965_s8  }
 0x2ce   : > { %s2480_s3 = sshll.u32 %s4963_s24, 7  ;;  %s2118_s5 = sshll.u32 %s4743_s7, 4  ;;  %s4996_s5 = int_to_ptr.vmem [resolvable:$true] %s2118_s5 }
 0x2cf   : > { %s5462_s9 = sld [smem:[#allocation94_spill]]  ;;  %s5463_s13 = scalar_lea.vmem [#allocation11], %s4711_s21 }
 0x2d0   : > { %s5000_s0 = sshll.u32 %s5463_s13, 4  ;;  %s2086_s14 = scalar_lea.sflag [#allocation5], %s4711_s21  ;;  %s2156_s0 = int_to_ptr.vmem [resolvable:$true] %s5000_s0 }
 0x2d1   : > { %s3249_s11 = scalar_lea.vmem %s4996_s5, 2048  ;;  %s3440_s7 = smov [#allocation8]  }
 0x2d2   : > { %p3250_p1 = scmp.ne.s32.totalorder %s4996_s5, %s3249_s11  ;;  %s3253_s17 = sshll.u32 %s3440_s7, 4  ;;  %s3254_s17 = int_to_ptr.vmem [resolvable:$false] %s3253_s17 }
 0x2d3   : > { %s3255_s4 = scalar_lea.vmem %s3254_s17, 4096  ;;  %p3256_p2 = scmp.lt.s32.totalorder %s4996_s5, %s3254_s17 }
 0x2d4   : > { %p3251_p10 = pnand %p3250_p1, %p5461_p3  ;;  %p3257_p7 = scmp.lt.s32.totalorder %s3255_s4, %s3249_s11 }
 0x2d5   : > { %s4994_s29 = scalar_lea.hbm %s5462_s9, %s2480_s3 }
 0x2d6   : > { %p3252_p11 = pneg %p3251_p10  ;;  %p3258_p5 = por %p3257_p7, %p3256_p2 }
 0x2d8   : > { %p3259_p12 = pnand %p3258_p5, %p3252_p11 }
 0x2da   : > { %3262 = shalt.err (!%p3259_p12)
}
 0x2db   : > { %s3263_s24 = scalar_lea.hbm %s4994_s29, 2048  ;;  %s3267_s1 = scalar_lea.hbm %s5462_s9, 8192 }
 0x2dc   : > { %p3264_p8 = scmp.ne.s32.totalorder %s4994_s29, %s3263_s24  ;;  %p3268_p0 = scmp.lt.u32.totalorder %s4994_s29, %s5462_s9 }
 0x2dd   : > { %p3269_p9 = scmp.lt.u32.totalorder %s3267_s1, %s3263_s24  ;;  %p3271_p1 = scmp.lt.u32.totalorder %s3263_s24, %s4994_s29 }
 0x2de   : > { %p3265_p6 = pnand %p3264_p8, %p5461_p3 }
 0x2df   : > { %p3270_p13 = por %p3269_p9, %p3268_p0 }
 0x2e0   : > { %p3266_p4 = pneg %p3265_p6 }
 0x2e1   : > { %p3272_p10 = por %p3271_p1, %p3270_p13 }
 0x2e3   : > { %p3273_p11 = pnand %p3272_p10, %p3266_p4 }
 0x2e5   : > { %3276 = shalt.err (!%p3273_p11)
}
 0x2e6   : > { %s3441_s11 = smov 128   ;;  %s3442_s17 = smov 256  }
 0x2e7   : > { %s3443_s4 = smov 8   ;;  %s3277_s3 = scalar_lea.vmem %s2156_s0, 16 }
 0x2e8   : > { %2685 = dma.vmem_to_hbm [thread:$0]  (%p5461_p3), %s4996_s5, 2048, %s4994_s29, %s2086_s14, %s3441_s11, %s3442_s17, %s3443_s4  }
 0x2e9   : > { %p3278_p2 = scmp.ne.s32.totalorder %s2156_s0, %s3277_s3  ;;  %s3444_s24 = smov [#allocation11]  }
 0x2ea   : > { %s3281_s15 = sshll.u32 %s3444_s24, 4  ;;  %s3282_s15 = int_to_ptr.vmem [resolvable:$false] %s3281_s15 }
 0x2eb   : > { %p3279_p7 = pnand %p3278_p2, %p5461_p3  ;;  %s3283_s1 = scalar_lea.vmem %s3282_s15, 32 }
 0x2ec   : > { %p3284_p12 = scmp.lt.s32.totalorder %s2156_s0, %s3282_s15  ;;  %p3285_p8 = scmp.lt.s32.totalorder %s3283_s1, %s3277_s3 }
 0x2ed   : > { %p3280_p5 = pneg %p3279_p7 }
 0x2ee   : > { %p3286_p6 = por %p3285_p8, %p3284_p12 }
 0x2f0   : > { %p3287_p4 = pnand %p3286_p6, %p3280_p5 }
 0x2f2   : > { %3290 = shalt.err (!%p3287_p4)
}
 0x2f3   : > { %s3291_s21 = scalar_lea.hbm %s4958_s26, 16  ;;  %s3295_s14 = scalar_lea.hbm %s5460_s12, 64 }
 0x2f4   : > { %p3292_p0 = scmp.ne.s32.totalorder %s4958_s26, %s3291_s21  ;;  %p3296_p1 = scmp.lt.u32.totalorder %s4958_s26, %s5460_s12 }
 0x2f5   : > { %p3297_p10 = scmp.lt.u32.totalorder %s3295_s14, %s3291_s21  ;;  %p3299_p2 = scmp.lt.u32.totalorder %s3291_s21, %s4958_s26 }
 0x2f6   : > { %p3293_p9 = pnand %p3292_p0, %p5461_p3 }
 0x2f7   : > { %p3298_p11 = por %p3297_p10, %p3296_p1 }
 0x2f8   : > { %p3294_p13 = pneg %p3293_p9 }
 0x2f9   : > { %p3300_p7 = por %p3299_p2, %p3298_p11 }
 0x2fb   : > { %p3301_p5 = pnand %p3300_p7, %p3294_p13 }
 0x2fd   : > { %3304 = shalt.err (!%p3301_p5)
}
 0x2fe   : > { %2687 = dma.vmem_to_hbm [thread:$0]  (%p5461_p3), %s2156_s0, 16, %s4958_s26, %s4965_s8   ;;  %vm1816_vm0 = vcmask 7168  }
 0x2ff   : > { %s2368_s11 = sshll.u32 %s3419_s28, 4  ;;  %p332_p12 = scmp.lt.s32.totalorder %s3415_s27, 1 }
 0x300   : > { %p334_p8 = scmp.lt.s32.totalorder %s2368_s11, 31  ;;  %s5464_s8 = sld [smem:[#allocation95_spill]] }
 0x301   : > { %s5492_s27 = smov (!%p332_p12, %s3415_s27), 1 }
 0x302   : > { %s5494_s11 = smov (!%p334_p8, %s2368_s11), 31  ;;  %s2369_s17 = sshll.u32 %s5492_s27, 5 }
 0x303   : > { %s337_s4 = sadd.s32 %s2369_s17, %s5494_s11 }
 0x304   : > { %s2370_s16 = sshll.u32 %s337_s4, 3 }
 0x306   : > { %s5051_s0 = scalar_lea.vmem %s5464_s8, %s2370_s16 }
 0x32d   : > { %v1741_v59 = vpop.xlane.xlu0 %1740 }
 0x32e   : > { %3129 = vlog2.f32 %v1741_v59 }
 0x331   : > { %v1737_v39 = vpop.xlane.xlu0 %1736  ;;  %v1743_v0 = vpop.xlane.xlu1 %1742 }
 0x332   : > { %3131 = vlog2.f32 %v1737_v39 }
 0x333   : > { %3133 = vlog2.f32 %v1743_v0 }
 0x335   : > { %v1739_v16 = vpop.xlane.xlu1 %1738 }
 0x336   : > { %3135 = vlog2.f32 %v1739_v16  ;;  %v1749_v9 = vpop.xlane.xlu0 %1748 }
 0x337   : > { %3137 = vlog2.f32 %v1749_v9 }
 0x338   : > { %v3130_v29 = vpop.eup %3129 }
 0x339   : > { %v1773_v38 = vmul.f32 0.6931472, %v3130_v29  ;;  %v1751_v32 = vpop.xlane.xlu1 %1750 }
 0x33a   : > { %3139 = vlog2.f32 %v1751_v32  ;;  %v1745_v15 = vpop.xlane.xlu0 %1744 }
 0x33b   : > { %v1802_v25 = vadd.f32 %v1773_v38, %v4880_v58  ;;  %3141 = vlog2.f32 %v1745_v15 }
 0x33c   : > { %v3132_v55 = vpop.eup %3131 }
 0x33d   : > { %v3134_v44 = vpop.eup %3133  ;;  %1819 = vst.msk [vmem:[%s5051_s0 + $0x10] sm:$0xff] %vm1816_vm0, %v1802_v25  ;;  %v1769_v37 = vmul.f32 0.6931472, %v3132_v55  ;;  %v1747_v13 = vpop.xlane.xlu1 %1746 }
 0x33e   : > { %v1775_v24 = vmul.f32 0.6931472, %v3134_v44  ;;  %3143 = vlog2.f32 %v1747_v13  ;;  %v1757_v14 = vpop.xlane.xlu0 %1756 }
 0x33f   : > { %v1800_v31 = vadd.f32 %v1769_v37, %v4884_v42  ;;  %3145 = vlog2.f32 %v1757_v14 }
 0x340   : > { %v3136_v3 = vpop.eup %3135  ;;  %v1803_v57 = vadd.f32 %v1775_v24, %v4888_v5 }
 0x341   : > { %v3138_v61 = vpop.eup %3137  ;;  %1817 = vst.msk [vmem:[%s5051_s0] sm:$0xff] %vm1816_vm0, %v1800_v31  ;;  %v1771_v58 = vmul.f32 0.6931472, %v3136_v3  ;;  %v1759_v33 = vpop.xlane.xlu1 %1758 }
 0x342   : > { %1820 = vst.msk [vmem:[%s5051_s0 + $0x18] sm:$0xff] %vm1816_vm0, %v1803_v57  ;;  %v1781_v7 = vmul.f32 0.6931472, %v3138_v61  ;;  %3147 = vlog2.f32 %v1759_v33  ;;  %v1753_v20 = vpop.xlane.xlu0 %1752 }
 0x343   : > { %v1801_v18 = vadd.f32 %v1771_v58, %v4892_v1  ;;  %3149 = vlog2.f32 %v1753_v20 }
 0x344   : > { %v3140_v42 = vpop.eup %3139  ;;  %v1806_v30 = vadd.f32 %v1781_v7, %v4898_v35 }
 0x345   : > { %v3142_v34 = vpop.eup %3141  ;;  %1818 = vst.msk [vmem:[%s5051_s0 + $0x8] sm:$0xff] %vm1816_vm0, %v1801_v18  ;;  %v1783_v5 = vmul.f32 0.6931472, %v3140_v42  ;;  %v1755_v27 = vpop.xlane.xlu1 %1754 }
 0x346   : > { %1823 = vst.msk [vmem:[%s5051_s0 + $0x30] sm:$0xff] %vm1816_vm0, %v1806_v30  ;;  %v1777_v46 = vmul.f32 0.6931472, %v3142_v34  ;;  %3151 = vlog2.f32 %v1755_v27  ;;  %v1761_v6 = vpop.xlane.xlu0 %1760 }
 0x347   : > { %v1807_v48 = vadd.f32 %v1783_v5, %v4896_v22  ;;  %3153 = vlog2.f32 %v1761_v6 }
 0x348   : > { %v3144_v1 = vpop.eup %3143  ;;  %v1804_v10 = vadd.f32 %v1777_v46, %v4906_v56 }
 0x349   : > { %v3146_v41 = vpop.eup %3145  ;;  %1824 = vst.msk [vmem:[%s5051_s0 + $0x38] sm:$0xff] %vm1816_vm0, %v1807_v48  ;;  %v1779_v35 = vmul.f32 0.6931472, %v3144_v1  ;;  %v1763_v49 = vpop.xlane.xlu1 %1762 }
 0x34a   : > { %1821 = vst.msk [vmem:[%s5051_s0 + $0x20] sm:$0xff] %vm1816_vm0, %v1804_v10  ;;  %v1789_v52 = vmul.f32 0.6931472, %v3146_v41  ;;  %3155 = vlog2.f32 %v1763_v49  ;;  %v1765_v50 = vpop.xlane.xlu0 %1764 }
 0x34b   : > { %v1805_v21 = vadd.f32 %v1779_v35, %v4904_v51  ;;  %3157 = vlog2.f32 %v1765_v50 }
 0x34c   : > { %v3148_v22 = vpop.eup %3147  ;;  %v1810_v54 = vadd.f32 %v1789_v52, %v4914_v12 }
 0x34d   : > { %v3150_v56 = vpop.eup %3149  ;;  %1822 = vst.msk [vmem:[%s5051_s0 + $0x28] sm:$0xff] %vm1816_vm0, %v1805_v21  ;;  %v1791_v2 = vmul.f32 0.6931472, %v3148_v22  ;;  %v1767_v28 = vpop.xlane.xlu1 %1766 }
 0x34e   : > { %1827 = vst.msk [vmem:[%s5051_s0 + $0x50] sm:$0xff] %vm1816_vm0, %v1810_v54  ;;  %v1785_v36 = vmul.f32 0.6931472, %v3150_v56  ;;  %3159 = vlog2.f32 %v1767_v28 }
 0x34f   : > { %v1811_v19 = vadd.f32 %v1791_v2, %v4912_v47 }
 0x350   : > { %v3152_v60 = vpop.eup %3151  ;;  %v1808_v51 = vadd.f32 %v1785_v36, %v4922_v8 }
 0x351   : > { %v3154_v43 = vpop.eup %3153  ;;  %1828 = vst.msk [vmem:[%s5051_s0 + $0x58] sm:$0xff] %vm1816_vm0, %v1811_v19  ;;  %v1787_v12 = vmul.f32 0.6931472, %v3152_v60 }
 0x352   : > { %1825 = vst.msk [vmem:[%s5051_s0 + $0x40] sm:$0xff] %vm1816_vm0, %v1808_v51  ;;  %v1793_v17 = vmul.f32 0.6931472, %v3154_v43 }
 0x353   : > { %v1809_v53 = vadd.f32 %v1787_v12, %v4920_v45 }
 0x354   : > { %v3156_v63 = vpop.eup %3155  ;;  %v1812_v40 = vadd.f32 %v1793_v17, %v4930_v11 }
 0x355   : > { %v3158_v4 = vpop.eup %3157  ;;  %1826 = vst.msk [vmem:[%s5051_s0 + $0x48] sm:$0xff] %vm1816_vm0, %v1809_v53  ;;  %v1795_v47 = vmul.f32 0.6931472, %v3156_v63 }
 0x356   : > { %1829 = vst.msk [vmem:[%s5051_s0 + $0x60] sm:$0xff] %vm1816_vm0, %v1812_v40  ;;  %v1797_v8 = vmul.f32 0.6931472, %v3158_v4 }
 0x357   : > { %v1813_v59 = vadd.f32 %v1795_v47, %v4928_v23 }
 0x358   : > { %v3160_v39 = vpop.eup %3159  ;;  %v1814_v0 = vadd.f32 %v1797_v8, %v4938_v62 }
 0x359   : > { %1830 = vst.msk [vmem:[%s5051_s0 + $0x68] sm:$0xff] %vm1816_vm0, %v1813_v59  ;;  %v1799_v16 = vmul.f32 0.6931472, %v3160_v39 }
 0x35a   : > { %1831 = vst.msk [vmem:[%s5051_s0 + $0x70] sm:$0xff] %vm1816_vm0, %v1814_v0 }
 0x35b   : > { %v1815_v45 = vadd.f32 %v1799_v16, %v4936_v26 }
 0x35d   : > { %1832 = vst.msk [vmem:[%s5051_s0 + $0x78] sm:$0xff] %vm1816_vm0, %v1815_v45 }
 0x35e PF: > { %p2709_p3 = scmp.ge.s32.totalorder %s3431_s6, 2  ;;  %s2167_s27 = sand.u32 1, %s3379_s18  }
 0x35f   : > { %p5465_p6 = scmp.ne.s32.totalorder %s5264_s30, 0  ;;  %s2168_s3 = scalar_lea.sflag [#allocation5], %s2167_s27 }
 0x361   : > { %p2699_p4 = pnand %p2709_p3, %p5465_p6 }
 0x363   : > { %3370 = dma.done.wait (!%p2699_p4), %s2168_s3, 2048  }
 0x364   : > { %3372 = vsyncadd (!%p2699_p4), %s2168_s3, 4294965248  ;;  %s5466_s24 = sadd.s32 4294967294, %s3431_s6  }
 0x365   : > { %s2188_s15 = sand.u32 1, %s5466_s24  }
 0x366   : > { %s2189_s1 = scalar_lea.sflag [#allocation10], %s2188_s15 }
 0x367   : > { %3374 = dma.done.wait (!%p2699_p4), %s2189_s1, 32  }
 0x368   : > { %3376 = vsyncadd (!%p2699_p4), %s2189_s1, 4294967264  ;;  %s28_s6 = sadd.s32 1, %s3431_s6   ;;  %s5468_s30 = sld [smem:[#allocation22_spill]] }
 0x369   : > { %p5108_p0 = scmp.ge.s32.totalorder %s28_s6, 6   ;;  %s5469_s5 = sld [smem:[#allocation16_spill]] }
 0x36a   : > { %s5470_s26 = sld [smem:[#allocation24_spill]]  ;;  %s5471_s27 = sld [smem:[#allocation17_spill]] }
 0x36b   : > { %s5472_s28 = sld [smem:[#allocation18_spill]]  ;;  %s5473_s29 = sld [smem:[#allocation20_spill]] }
 0x36c   : > { %s5474_s14 = sld [smem:[#allocation21_spill]]  ;;  %s5476_s18 = smov %s3383_s19 }
 0x36d   : > { %s5477_s19 = smov %s3387_s20  ;;  %s5478_s20 = smov %s3665_s2 }
 0x36e   : > { %s5479_s21 = smov %s3395_s22  ;;  %s5480_s22 = smov %s3399_s23 }
 0x36f   : > { %s5481_s23 = smov %s5468_s30  ;;  %s5482_s24 = smov %s3407_s25 }
 0x370   : > { %s5483_s25 = smov %s5469_s5  ;;  %27 = sbr.rel (!%p5108_p0) target bundleno = 21 (0x15), region = 136 }
 0x372   : > { %s5484_s30 = smov %s5474_s14 }
 0x377   :  { %2201 = vsyncpa [#allocation4], 1 }
 0x378   :  { %2203 = vsyncpa [#allocation4 + $0x1], 1 }
 0x379   :  { %2204 = vsyncpa [#allocation7], 1 }
 0x37a   :  { %2206 = vsyncpa [#allocation7 + $0x1], 1 }
 0x37b   :  { %2207 = vsyncpa [#allocation5], 1 }
 0x37c   :  { %2209 = vsyncpa [#allocation5 + $0x1], 1 }
 0x37d   :  { %2210 = vsyncpa [#allocation10], 1 }
 0x37e   :  { %2212 = vsyncpa [#allocation10 + $0x1], 1 }

</bundles_post_ra>
